<compile_context>
chip_gen: v7x
topology: tpu7x:2x2x1
jax: 0.10.0
libtpu: 0.0.40
codegen_flags: <defaults>
</compile_context>

<pallas_src>
import jax
import jax.numpy as jnp
from jax.experimental import pallas as pl
from jax.experimental.pallas import tpu as pltpu


def _decoder_rnn_kernel(x_ref, h0_ref, wih_ref, bcomb_ref,
                        whr_ref, whz_ref, whn_ref, bhn_ref,
                        wlin_ref, blin_ref,
                        out_ref, hout_ref,
                        gir_ref, giz_ref, gin_ref, hs_ref):
    SB, H = hs_ref.shape
    B = h0_ref.shape[0]
    S = SB // B

    # (1) Input projection for ALL timesteps in one MXU pass; biases folded:
    #     r/z gates carry (b_ih + b_hh), n gate carries b_in only.
    gi = jnp.dot(x_ref[...], wih_ref[...],
                 preferred_element_type=jnp.float32) + bcomb_ref[...]
    # Split once into per-gate scratches (done a single time, outside the loop).
    gir_ref[...] = gi[:, 0:H]
    giz_ref[...] = gi[:, H:2 * H]
    gin_ref[...] = gi[:, 2 * H:3 * H]

    # Hoist loop-invariant operands out of the time loop (JAX does not CSE
    # broadcasts / reloads inside the unrolled loop body).
    w_hr = whr_ref[...]
    w_hz = whz_ref[...]
    w_hn = whn_ref[...]
    b_hn = bhn_ref[...]

    # (2) Sequential GRU recurrence; h carried as a fori_loop value.
    def step(t, h):
        row = t * B
        h_r = jnp.dot(h, w_hr, preferred_element_type=jnp.float32)
        h_z = jnp.dot(h, w_hz, preferred_element_type=jnp.float32)
        h_n = jnp.dot(h, w_hn, preferred_element_type=jnp.float32) + b_hn
        r = jax.nn.sigmoid(gir_ref[pl.ds(row, B), :] + h_r)
        z = jax.nn.sigmoid(giz_ref[pl.ds(row, B), :] + h_z)
        n = jnp.tanh(gin_ref[pl.ds(row, B), :] + r * h_n)
        h_new = (1.0 - z) * n + z * h
        hs_ref[pl.ds(row, B), :] = h_new
        return h_new

    h_last = jax.lax.fori_loop(0, S, step, h0_ref[...],
                               unroll=True if S <= 16 else 4)

    # (3) Output Linear + Sigmoid over the whole sequence in one MXU pass,
    #     stored as a single slab (no per-step masked partial stores).
    y = jnp.dot(hs_ref[...], wlin_ref[...],
                preferred_element_type=jnp.float32) + blin_ref[...]
    out_ref[...] = jax.nn.sigmoid(y).astype(out_ref.dtype)

    # Final hidden state written exactly once.
    hout_ref[...] = h_last.astype(hout_ref.dtype)


def decoder_rnn_forward(inp, hidden, params):
    """inp: (S, B, I) f32; hidden: (1, B, H) f32."""
    S, B, I = inp.shape
    H = hidden.shape[-1]

    w_ih = params["w_ih"]          # (3H, I)  rows ordered [r, z, n]
    w_hh = params["w_hh"]          # (3H, H)
    b_ih = params["b_ih"]          # (3H,)
    b_hh = params["b_hh"]          # (3H,)

    # Fused input-projection weight (I, 3H) with combined biases:
    #   r, z gates: b_ih + b_hh ; n gate: b_in only (b_hn stays inside r*(...)).
    w_ih_t = w_ih.T
    b_comb = jnp.concatenate([
        b_ih[0:H] + b_hh[0:H],
        b_ih[H:2 * H] + b_hh[H:2 * H],
        b_ih[2 * H:3 * H],
    ]).reshape(1, 3 * H)

    # Per-gate recurrent weights (pre-transposed to (H, H)).
    w_hr_t = w_hh[0:H].T
    w_hz_t = w_hh[H:2 * H].T
    w_hn_t = w_hh[2 * H:3 * H].T
    b_hn = b_hh[2 * H:3 * H].reshape(1, H)

    w_lin_t = params["w_lin"].T    # (H, I)
    b_lin = params["b_lin"].reshape(1, I)

    # Lane-dense 2-D views for the batched matmuls.
    x2d = inp.reshape(S * B, I)
    h0 = hidden.reshape(B, H)

    grid_spec = pltpu.PrefetchScalarGridSpec(
        num_scalar_prefetch=0,
        grid=(1,),
        in_specs=[
            pl.BlockSpec((S * B, I), lambda i: (0, 0)),    # x (all timesteps)
            pl.BlockSpec((B, H), lambda i: (0, 0)),        # h0
            pl.BlockSpec((I, 3 * H), lambda i: (0, 0)),    # W_ih^T (fused)
            pl.BlockSpec((1, 3 * H), lambda i: (0, 0)),    # folded biases
            pl.BlockSpec((H, H), lambda i: (0, 0)),        # W_hr^T
            pl.BlockSpec((H, H), lambda i: (0, 0)),        # W_hz^T
            pl.BlockSpec((H, H), lambda i: (0, 0)),        # W_hn^T
            pl.BlockSpec((1, H), lambda i: (0, 0)),        # b_hn
            pl.BlockSpec((H, I), lambda i: (0, 0)),        # W_lin^T
            pl.BlockSpec((1, I), lambda i: (0, 0)),        # b_lin
        ],
        out_specs=[
            pl.BlockSpec((S * B, I), lambda i: (0, 0)),    # output slab
            pl.BlockSpec((B, H), lambda i: (0, 0)),        # final hidden
        ],
        scratch_shapes=[
            pltpu.VMEM((S * B, H), jnp.float32),           # gi_r (all steps)
            pltpu.VMEM((S * B, H), jnp.float32),           # gi_z
            pltpu.VMEM((S * B, H), jnp.float32),           # gi_n
            pltpu.VMEM((S * B, H), jnp.float32),           # staged hidden states
        ],
    )

    out2d, h_out = pl.pallas_call(
        _decoder_rnn_kernel,
        out_shape=(
            jax.ShapeDtypeStruct((S * B, I), jnp.float32),
            jax.ShapeDtypeStruct((B, H), jnp.float32),
        ),
        grid_spec=grid_spec,
        compiler_params=pltpu.CompilerParams(
            dimension_semantics=("arbitrary",),  # single sequential grid step
        ),
    )(x2d, h0, w_ih_t, b_comb, w_hr_t, w_hz_t, w_hn_t, b_hn, w_lin_t, b_lin)

    return out2d.reshape(S, B, I), h_out.reshape(1, B, H)


def decoder_rnn_reference(inp, hidden, params):
    """Pure-JAX reference matching torch.nn.GRU + Linear + Sigmoid."""
    H = hidden.shape[-1]
    w_ih, w_hh = params["w_ih"], params["w_hh"]
    b_ih, b_hh = params["b_ih"], params["b_hh"]
    h = hidden[0]

    def step(h, x):
        gi = x @ w_ih.T + b_ih
        gh = h @ w_hh.T + b_hh
        i_r, i_z, i_n = gi[:, :H], gi[:, H:2 * H], gi[:, 2 * H:]
        h_r, h_z, h_n = gh[:, :H], gh[:, H:2 * H], gh[:, 2 * H:]
        r = jax.nn.sigmoid(i_r + h_r)
        z = jax.nn.sigmoid(i_z + h_z)
        n = jnp.tanh(i_n + r * h_n)
        h_new = (1.0 - z) * n + z * h
        return h_new, h_new

    h_last, hs = jax.lax.scan(step, h, inp)
    out = jax.nn.sigmoid(hs @ params["w_lin"].T + params["b_lin"])
    return out, h_last[None]


def init_params(key, input_size, hidden_size):
    k = jax.random.split(key, 6)
    bound = 1.0 / jnp.sqrt(hidden_size)
    u = lambda kk, shp: jax.random.uniform(kk, shp, jnp.float32, -bound, bound)
    return {
        "w_ih": u(k[0], (3 * hidden_size, input_size)),
        "w_hh": u(k[1], (3 * hidden_size, hidden_size)),
        "b_ih": u(k[2], (3 * hidden_size,)),
        "b_hh": u(k[3], (3 * hidden_size,)),
        "w_lin": u(k[4], (input_size, hidden_size)),
        "b_lin": u(k[5], (input_size,)),
    }


if __name__ == "__main__":
    seq_len, batch, input_size, hidden_size = 8, 2, 16, 32

    key = jax.random.PRNGKey(0)
    k_inp, k_hid, k_par = jax.random.split(key, 3)
    inp = jax.random.normal(k_inp, (seq_len, batch, input_size), jnp.float32)
    hidden = jax.random.normal(k_hid, (1, batch, hidden_size), jnp.float32)
    params = init_params(k_par, input_size, hidden_size)

    out, h_out = decoder_rnn_forward(inp, hidden, params)
    out = jax.block_until_ready(out)
    h_out = jax.block_until_ready(h_out)

    out_ref, h_ref = decoder_rnn_reference(inp, hidden, params)
    assert out.shape == (seq_len, batch, input_size)
    assert h_out.shape == (1, batch, hidden_size)
    assert jnp.allclose(out, out_ref, atol=1e-5, rtol=1e-5)
    assert jnp.allclose(h_out, h_ref, atol=1e-5, rtol=1e-5)

    print("KERNEL_OK")
</pallas_src>

<mosaic_0001>
module attributes {stable_mosaic.version = 11 : i64} {
  func.func @_decoder_rnn_kernel(%arg0: i32, %arg1: memref<16x16xf32, #tpu.memory_space<vmem>>, %arg2: memref<2x32xf32, #tpu.memory_space<vmem>>, %arg3: memref<16x96xf32, #tpu.memory_space<vmem>>, %arg4: memref<1x96xf32, #tpu.memory_space<vmem>>, %arg5: memref<32x32xf32, #tpu.memory_space<vmem>>, %arg6: memref<32x32xf32, #tpu.memory_space<vmem>>, %arg7: memref<32x32xf32, #tpu.memory_space<vmem>>, %arg8: memref<1x32xf32, #tpu.memory_space<vmem>>, %arg9: memref<32x16xf32, #tpu.memory_space<vmem>>, %arg10: memref<1x16xf32, #tpu.memory_space<vmem>>, %arg11: memref<16x16xf32, #tpu.memory_space<vmem>>, %arg12: memref<2x32xf32, #tpu.memory_space<vmem>>, %arg13: memref<16x32xf32, #tpu.memory_space<vmem>>, %arg14: memref<16x32xf32, #tpu.memory_space<vmem>>, %arg15: memref<16x32xf32, #tpu.memory_space<vmem>>, %arg16: memref<16x32xf32, #tpu.memory_space<vmem>>) attributes {dimension_semantics = [#tpu.dimension_semantics<arbitrary>], iteration_bounds = array<i64: 1>, scalar_prefetch = 0 : i64, scratch_operands = 4 : i64, tpu.core_type = #tpu.core_type<tc>, window_params = [{pipeline_mode = #tpu.pipeline_mode<synchronous>, transform_indices = @transform_0, window_bounds = array<i64: 16, 16>}, {pipeline_mode = #tpu.pipeline_mode<synchronous>, transform_indices = @transform_1, window_bounds = array<i64: 2, 32>}, {pipeline_mode = #tpu.pipeline_mode<synchronous>, transform_indices = @transform_2, window_bounds = array<i64: 16, 96>}, {pipeline_mode = #tpu.pipeline_mode<synchronous>, transform_indices = @transform_3, window_bounds = array<i64: 1, 96>}, {pipeline_mode = #tpu.pipeline_mode<synchronous>, transform_indices = @transform_4, window_bounds = array<i64: 32, 32>}, {pipeline_mode = #tpu.pipeline_mode<synchronous>, transform_indices = @transform_5, window_bounds = array<i64: 32, 32>}, {pipeline_mode = #tpu.pipeline_mode<synchronous>, transform_indices = @transform_6, window_bounds = array<i64: 32, 32>}, {pipeline_mode = #tpu.pipeline_mode<synchronous>, transform_indices = @transform_7, window_bounds = array<i64: 1, 32>}, {pipeline_mode = #tpu.pipeline_mode<synchronous>, transform_indices = @transform_8, window_bounds = array<i64: 32, 16>}, {pipeline_mode = #tpu.pipeline_mode<synchronous>, transform_indices = @transform_9, window_bounds = array<i64: 1, 16>}, {pipeline_mode = #tpu.pipeline_mode<synchronous>, transform_indices = @transform_10, window_bounds = array<i64: 16, 16>}, {pipeline_mode = #tpu.pipeline_mode<synchronous>, transform_indices = @transform_11, window_bounds = array<i64: 2, 32>}]} {
    %c0 = arith.constant 0 : index
    %c0_0 = arith.constant 0 : index
    %0 = vector.load %arg1[%c0, %c0_0] : memref<16x16xf32, #tpu.memory_space<vmem>>, vector<16x16xf32>
    %c0_1 = arith.constant 0 : index
    %c0_2 = arith.constant 0 : index
    %1 = vector.load %arg3[%c0_1, %c0_2] : memref<16x96xf32, #tpu.memory_space<vmem>>, vector<16x96xf32>
    %cst = arith.constant dense<0.000000e+00> : vector<16x96xf32>
    %2 = tpu.matmul %0, %1, %cst {dimension_numbers = #tpu.dot_dimension_numbers<[1], [0], [0], [1], [0, 0, 1, 1], [], []>} : vector<16x16xf32>, vector<16x96xf32>, vector<16x96xf32> -> vector<16x96xf32>
    %c0_3 = arith.constant 0 : index
    %c0_4 = arith.constant 0 : index
    %3 = vector.load %arg4[%c0_3, %c0_4] : memref<1x96xf32, #tpu.memory_space<vmem>>, vector<1x96xf32>
    %4 = vector.broadcast %3 : vector<1x96xf32> to vector<16x96xf32>
    %5 = arith.addf %2, %4 : vector<16x96xf32>
    %6 = vector.extract_strided_slice %5 {offsets = [0, 0], sizes = [16, 32], strides = [1, 1]} : vector<16x96xf32> to vector<16x32xf32>
    %c0_5 = arith.constant 0 : index
    %c0_6 = arith.constant 0 : index
    %7 = vector.load %arg13[%c0_5, %c0_6] : memref<16x32xf32, #tpu.memory_space<vmem>>, vector<16x32xf32>
    tpu.vector_store %arg13[%c0_5, %c0_6], %6 {strides = array<i32>} : memref<16x32xf32, #tpu.memory_space<vmem>>, vector<16x32xf32>,
    %8 = vector.extract_strided_slice %5 {offsets = [0, 32], sizes = [16, 32], strides = [1, 1]} : vector<16x96xf32> to vector<16x32xf32>
    %c0_7 = arith.constant 0 : index
    %c0_8 = arith.constant 0 : index
    %9 = vector.load %arg14[%c0_7, %c0_8] : memref<16x32xf32, #tpu.memory_space<vmem>>, vector<16x32xf32>
    tpu.vector_store %arg14[%c0_7, %c0_8], %8 {strides = array<i32>} : memref<16x32xf32, #tpu.memory_space<vmem>>, vector<16x32xf32>,
    %10 = vector.extract_strided_slice %5 {offsets = [0, 64], sizes = [16, 32], strides = [1, 1]} : vector<16x96xf32> to vector<16x32xf32>
    %c0_9 = arith.constant 0 : index
    %c0_10 = arith.constant 0 : index
    %11 = vector.load %arg15[%c0_9, %c0_10] : memref<16x32xf32, #tpu.memory_space<vmem>>, vector<16x32xf32>
    tpu.vector_store %arg15[%c0_9, %c0_10], %10 {strides = array<i32>} : memref<16x32xf32, #tpu.memory_space<vmem>>, vector<16x32xf32>,
    %c0_11 = arith.constant 0 : index
    %c0_12 = arith.constant 0 : index
    %12 = vector.load %arg5[%c0_11, %c0_12] : memref<32x32xf32, #tpu.memory_space<vmem>>, vector<32x32xf32>
    %c0_13 = arith.constant 0 : index
    %c0_14 = arith.constant 0 : index
    %13 = vector.load %arg6[%c0_13, %c0_14] : memref<32x32xf32, #tpu.memory_space<vmem>>, vector<32x32xf32>
    %c0_15 = arith.constant 0 : index
    %c0_16 = arith.constant 0 : index
    %14 = vector.load %arg7[%c0_15, %c0_16] : memref<32x32xf32, #tpu.memory_space<vmem>>, vector<32x32xf32>
    %c0_17 = arith.constant 0 : index
    %c0_18 = arith.constant 0 : index
    %15 = vector.load %arg8[%c0_17, %c0_18] : memref<1x32xf32, #tpu.memory_space<vmem>>, vector<1x32xf32>
    %c0_19 = arith.constant 0 : index
    %c0_20 = arith.constant 0 : index
    %16 = vector.load %arg2[%c0_19, %c0_20] : memref<2x32xf32, #tpu.memory_space<vmem>>, vector<2x32xf32>
    %c0_i32 = arith.constant 0 : i32
    %c2_i32 = arith.constant 2 : i32
    %17 = arith.muli %c0_i32, %c2_i32 : i32
    %cst_21 = arith.constant dense<0.000000e+00> : vector<2x32xf32>
    %18 = tpu.matmul %16, %12, %cst_21 {dimension_numbers = #tpu.dot_dimension_numbers<[1], [0], [0], [1], [0, 0, 1, 1], [], []>} : vector<2x32xf32>, vector<32x32xf32>, vector<2x32xf32> -> vector<2x32xf32>
    %cst_22 = arith.constant dense<0.000000e+00> : vector<2x32xf32>
    %19 = tpu.matmul %16, %13, %cst_22 {dimension_numbers = #tpu.dot_dimension_numbers<[1], [0], [0], [1], [0, 0, 1, 1], [], []>} : vector<2x32xf32>, vector<32x32xf32>, vector<2x32xf32> -> vector<2x32xf32>
    %cst_23 = arith.constant dense<0.000000e+00> : vector<2x32xf32>
    %20 = tpu.matmul %16, %14, %cst_23 {dimension_numbers = #tpu.dot_dimension_numbers<[1], [0], [0], [1], [0, 0, 1, 1], [], []>} : vector<2x32xf32>, vector<32x32xf32>, vector<2x32xf32> -> vector<2x32xf32>
    %21 = vector.broadcast %15 : vector<1x32xf32> to vector<2x32xf32>
    %22 = arith.addf %20, %21 : vector<2x32xf32>
    %23 = arith.index_cast %17 : i32 to index
    %c0_24 = arith.constant 0 : index
    %24 = vector.load %arg13[%23, %c0_24] : memref<16x32xf32, #tpu.memory_space<vmem>>, vector<2x32xf32>
    %25 = arith.addf %24, %18 : vector<2x32xf32>
    %26 = arith.negf %25 : vector<2x32xf32>
    %27 = math.exp %26 : vector<2x32xf32>
    %cst_25 = arith.constant 1.000000e+00 : f32
    %28 = vector.broadcast %cst_25 : f32 to vector<2x32xf32>
    %29 = arith.addf %28, %27 : vector<2x32xf32>
    %30 = arith.divf %28, %29 : vector<2x32xf32>
    %31 = arith.index_cast %17 : i32 to index
    %c0_26 = arith.constant 0 : index
    %32 = vector.load %arg14[%31, %c0_26] : memref<16x32xf32, #tpu.memory_space<vmem>>, vector<2x32xf32>
    %33 = arith.addf %32, %19 : vector<2x32xf32>
    %34 = arith.negf %33 : vector<2x32xf32>
    %35 = math.exp %34 : vector<2x32xf32>
    %cst_27 = arith.constant 1.000000e+00 : f32
    %36 = vector.broadcast %cst_27 : f32 to vector<2x32xf32>
    %37 = arith.addf %36, %35 : vector<2x32xf32>
    %38 = arith.divf %36, %37 : vector<2x32xf32>
    %39 = arith.index_cast %17 : i32 to index
    %c0_28 = arith.constant 0 : index
    %40 = vector.load %arg15[%39, %c0_28] : memref<16x32xf32, #tpu.memory_space<vmem>>, vector<2x32xf32>
    %41 = arith.mulf %30, %22 : vector<2x32xf32>
    %42 = arith.addf %40, %41 : vector<2x32xf32>
    %43 = math.tanh %42 : vector<2x32xf32>
    %cst_29 = arith.constant 1.000000e+00 : f32
    %44 = vector.broadcast %cst_29 : f32 to vector<2x32xf32>
    %45 = arith.subf %44, %38 : vector<2x32xf32>
    %46 = arith.mulf %45, %43 : vector<2x32xf32>
    %47 = arith.mulf %38, %16 : vector<2x32xf32>
    %48 = arith.addf %46, %47 : vector<2x32xf32>
    %49 = arith.index_cast %17 : i32 to index
    %c0_30 = arith.constant 0 : index
    %50 = vector.load %arg16[%49, %c0_30] : memref<16x32xf32, #tpu.memory_space<vmem>>, vector<2x32xf32>
    tpu.vector_store %arg16[%49, %c0_30], %48 {strides = array<i32>} : memref<16x32xf32, #tpu.memory_space<vmem>>, vector<2x32xf32>,
    %c1_i32 = arith.constant 1 : i32
    %c2_i32_31 = arith.constant 2 : i32
    %51 = arith.muli %c1_i32, %c2_i32_31 : i32
    %cst_32 = arith.constant dense<0.000000e+00> : vector<2x32xf32>
    %52 = tpu.matmul %48, %12, %cst_32 {dimension_numbers = #tpu.dot_dimension_numbers<[1], [0], [0], [1], [0, 0, 1, 1], [], []>} : vector<2x32xf32>, vector<32x32xf32>, vector<2x32xf32> -> vector<2x32xf32>
    %cst_33 = arith.constant dense<0.000000e+00> : vector<2x32xf32>
    %53 = tpu.matmul %48, %13, %cst_33 {dimension_numbers = #tpu.dot_dimension_numbers<[1], [0], [0], [1], [0, 0, 1, 1], [], []>} : vector<2x32xf32>, vector<32x32xf32>, vector<2x32xf32> -> vector<2x32xf32>
    %cst_34 = arith.constant dense<0.000000e+00> : vector<2x32xf32>
    %54 = tpu.matmul %48, %14, %cst_34 {dimension_numbers = #tpu.dot_dimension_numbers<[1], [0], [0], [1], [0, 0, 1, 1], [], []>} : vector<2x32xf32>, vector<32x32xf32>, vector<2x32xf32> -> vector<2x32xf32>
    %55 = vector.broadcast %15 : vector<1x32xf32> to vector<2x32xf32>
    %56 = arith.addf %54, %55 : vector<2x32xf32>
    %57 = arith.index_cast %51 : i32 to index
    %c0_35 = arith.constant 0 : index
    %58 = vector.load %arg13[%57, %c0_35] : memref<16x32xf32, #tpu.memory_space<vmem>>, vector<2x32xf32>
    %59 = arith.addf %58, %52 : vector<2x32xf32>
    %60 = arith.negf %59 : vector<2x32xf32>
    %61 = math.exp %60 : vector<2x32xf32>
    %cst_36 = arith.constant 1.000000e+00 : f32
    %62 = vector.broadcast %cst_36 : f32 to vector<2x32xf32>
    %63 = arith.addf %62, %61 : vector<2x32xf32>
    %64 = arith.divf %62, %63 : vector<2x32xf32>
    %65 = arith.index_cast %51 : i32 to index
    %c0_37 = arith.constant 0 : index
    %66 = vector.load %arg14[%65, %c0_37] : memref<16x32xf32, #tpu.memory_space<vmem>>, vector<2x32xf32>
    %67 = arith.addf %66, %53 : vector<2x32xf32>
    %68 = arith.negf %67 : vector<2x32xf32>
    %69 = math.exp %68 : vector<2x32xf32>
    %cst_38 = arith.constant 1.000000e+00 : f32
    %70 = vector.broadcast %cst_38 : f32 to vector<2x32xf32>
    %71 = arith.addf %70, %69 : vector<2x32xf32>
    %72 = arith.divf %70, %71 : vector<2x32xf32>
    %73 = arith.index_cast %51 : i32 to index
    %c0_39 = arith.constant 0 : index
    %74 = vector.load %arg15[%73, %c0_39] : memref<16x32xf32, #tpu.memory_space<vmem>>, vector<2x32xf32>
    %75 = arith.mulf %64, %56 : vector<2x32xf32>
    %76 = arith.addf %74, %75 : vector<2x32xf32>
    %77 = math.tanh %76 : vector<2x32xf32>
    %cst_40 = arith.constant 1.000000e+00 : f32
    %78 = vector.broadcast %cst_40 : f32 to vector<2x32xf32>
    %79 = arith.subf %78, %72 : vector<2x32xf32>
    %80 = arith.mulf %79, %77 : vector<2x32xf32>
    %81 = arith.mulf %72, %48 : vector<2x32xf32>
    %82 = arith.addf %80, %81 : vector<2x32xf32>
    %83 = arith.index_cast %51 : i32 to index
    %c0_41 = arith.constant 0 : index
    %84 = vector.load %arg16[%83, %c0_41] : memref<16x32xf32, #tpu.memory_space<vmem>>, vector<2x32xf32>
    tpu.vector_store %arg16[%83, %c0_41], %82 {strides = array<i32>} : memref<16x32xf32, #tpu.memory_space<vmem>>, vector<2x32xf32>,
    %c2_i32_42 = arith.constant 2 : i32
    %c2_i32_43 = arith.constant 2 : i32
    %85 = arith.muli %c2_i32_42, %c2_i32_43 : i32
    %cst_44 = arith.constant dense<0.000000e+00> : vector<2x32xf32>
    %86 = tpu.matmul %82, %12, %cst_44 {dimension_numbers = #tpu.dot_dimension_numbers<[1], [0], [0], [1], [0, 0, 1, 1], [], []>} : vector<2x32xf32>, vector<32x32xf32>, vector<2x32xf32> -> vector<2x32xf32>
    %cst_45 = arith.constant dense<0.000000e+00> : vector<2x32xf32>
    %87 = tpu.matmul %82, %13, %cst_45 {dimension_numbers = #tpu.dot_dimension_numbers<[1], [0], [0], [1], [0, 0, 1, 1], [], []>} : vector<2x32xf32>, vector<32x32xf32>, vector<2x32xf32> -> vector<2x32xf32>
    %cst_46 = arith.constant dense<0.000000e+00> : vector<2x32xf32>
    %88 = tpu.matmul %82, %14, %cst_46 {dimension_numbers = #tpu.dot_dimension_numbers<[1], [0], [0], [1], [0, 0, 1, 1], [], []>} : vector<2x32xf32>, vector<32x32xf32>, vector<2x32xf32> -> vector<2x32xf32>
    %89 = vector.broadcast %15 : vector<1x32xf32> to vector<2x32xf32>
    %90 = arith.addf %88, %89 : vector<2x32xf32>
    %91 = arith.index_cast %85 : i32 to index
    %c0_47 = arith.constant 0 : index
    %92 = vector.load %arg13[%91, %c0_47] : memref<16x32xf32, #tpu.memory_space<vmem>>, vector<2x32xf32>
    %93 = arith.addf %92, %86 : vector<2x32xf32>
    %94 = arith.negf %93 : vector<2x32xf32>
    %95 = math.exp %94 : vector<2x32xf32>
    %cst_48 = arith.constant 1.000000e+00 : f32
    %96 = vector.broadcast %cst_48 : f32 to vector<2x32xf32>
    %97 = arith.addf %96, %95 : vector<2x32xf32>
    %98 = arith.divf %96, %97 : vector<2x32xf32>
    %99 = arith.index_cast %85 : i32 to index
    %c0_49 = arith.constant 0 : index
    %100 = vector.load %arg14[%99, %c0_49] : memref<16x32xf32, #tpu.memory_space<vmem>>, vector<2x32xf32>
    %101 = arith.addf %100, %87 : vector<2x32xf32>
    %102 = arith.negf %101 : vector<2x32xf32>
    %103 = math.exp %102 : vector<2x32xf32>
    %cst_50 = arith.constant 1.000000e+00 : f32
    %104 = vector.broadcast %cst_50 : f32 to vector<2x32xf32>
    %105 = arith.addf %104, %103 : vector<2x32xf32>
    %106 = arith.divf %104, %105 : vector<2x32xf32>
    %107 = arith.index_cast %85 : i32 to index
    %c0_51 = arith.constant 0 : index
    %108 = vector.load %arg15[%107, %c0_51] : memref<16x32xf32, #tpu.memory_space<vmem>>, vector<2x32xf32>
    %109 = arith.mulf %98, %90 : vector<2x32xf32>
    %110 = arith.addf %108, %109 : vector<2x32xf32>
    %111 = math.tanh %110 : vector<2x32xf32>
    %cst_52 = arith.constant 1.000000e+00 : f32
    %112 = vector.broadcast %cst_52 : f32 to vector<2x32xf32>
    %113 = arith.subf %112, %106 : vector<2x32xf32>
    %114 = arith.mulf %113, %111 : vector<2x32xf32>
    %115 = arith.mulf %106, %82 : vector<2x32xf32>
    %116 = arith.addf %114, %115 : vector<2x32xf32>
    %117 = arith.index_cast %85 : i32 to index
    %c0_53 = arith.constant 0 : index
    %118 = vector.load %arg16[%117, %c0_53] : memref<16x32xf32, #tpu.memory_space<vmem>>, vector<2x32xf32>
    tpu.vector_store %arg16[%117, %c0_53], %116 {strides = array<i32>} : memref<16x32xf32, #tpu.memory_space<vmem>>, vector<2x32xf32>,
    %c3_i32 = arith.constant 3 : i32
    %c2_i32_54 = arith.constant 2 : i32
    %119 = arith.muli %c3_i32, %c2_i32_54 : i32
    %cst_55 = arith.constant dense<0.000000e+00> : vector<2x32xf32>
    %120 = tpu.matmul %116, %12, %cst_55 {dimension_numbers = #tpu.dot_dimension_numbers<[1], [0], [0], [1], [0, 0, 1, 1], [], []>} : vector<2x32xf32>, vector<32x32xf32>, vector<2x32xf32> -> vector<2x32xf32>
    %cst_56 = arith.constant dense<0.000000e+00> : vector<2x32xf32>
    %121 = tpu.matmul %116, %13, %cst_56 {dimension_numbers = #tpu.dot_dimension_numbers<[1], [0], [0], [1], [0, 0, 1, 1], [], []>} : vector<2x32xf32>, vector<32x32xf32>, vector<2x32xf32> -> vector<2x32xf32>
    %cst_57 = arith.constant dense<0.000000e+00> : vector<2x32xf32>
    %122 = tpu.matmul %116, %14, %cst_57 {dimension_numbers = #tpu.dot_dimension_numbers<[1], [0], [0], [1], [0, 0, 1, 1], [], []>} : vector<2x32xf32>, vector<32x32xf32>, vector<2x32xf32> -> vector<2x32xf32>
    %123 = vector.broadcast %15 : vector<1x32xf32> to vector<2x32xf32>
    %124 = arith.addf %122, %123 : vector<2x32xf32>
    %125 = arith.index_cast %119 : i32 to index
    %c0_58 = arith.constant 0 : index
    %126 = vector.load %arg13[%125, %c0_58] : memref<16x32xf32, #tpu.memory_space<vmem>>, vector<2x32xf32>
    %127 = arith.addf %126, %120 : vector<2x32xf32>
    %128 = arith.negf %127 : vector<2x32xf32>
    %129 = math.exp %128 : vector<2x32xf32>
    %cst_59 = arith.constant 1.000000e+00 : f32
    %130 = vector.broadcast %cst_59 : f32 to vector<2x32xf32>
    %131 = arith.addf %130, %129 : vector<2x32xf32>
    %132 = arith.divf %130, %131 : vector<2x32xf32>
    %133 = arith.index_cast %119 : i32 to index
    %c0_60 = arith.constant 0 : index
    %134 = vector.load %arg14[%133, %c0_60] : memref<16x32xf32, #tpu.memory_space<vmem>>, vector<2x32xf32>
    %135 = arith.addf %134, %121 : vector<2x32xf32>
    %136 = arith.negf %135 : vector<2x32xf32>
    %137 = math.exp %136 : vector<2x32xf32>
    %cst_61 = arith.constant 1.000000e+00 : f32
    %138 = vector.broadcast %cst_61 : f32 to vector<2x32xf32>
    %139 = arith.addf %138, %137 : vector<2x32xf32>
    %140 = arith.divf %138, %139 : vector<2x32xf32>
    %141 = arith.index_cast %119 : i32 to index
    %c0_62 = arith.constant 0 : index
    %142 = vector.load %arg15[%141, %c0_62] : memref<16x32xf32, #tpu.memory_space<vmem>>, vector<2x32xf32>
    %143 = arith.mulf %132, %124 : vector<2x32xf32>
    %144 = arith.addf %142, %143 : vector<2x32xf32>
    %145 = math.tanh %144 : vector<2x32xf32>
    %cst_63 = arith.constant 1.000000e+00 : f32
    %146 = vector.broadcast %cst_63 : f32 to vector<2x32xf32>
    %147 = arith.subf %146, %140 : vector<2x32xf32>
    %148 = arith.mulf %147, %145 : vector<2x32xf32>
    %149 = arith.mulf %140, %116 : vector<2x32xf32>
    %150 = arith.addf %148, %149 : vector<2x32xf32>
    %151 = arith.index_cast %119 : i32 to index
    %c0_64 = arith.constant 0 : index
    %152 = vector.load %arg16[%151, %c0_64] : memref<16x32xf32, #tpu.memory_space<vmem>>, vector<2x32xf32>
    tpu.vector_store %arg16[%151, %c0_64], %150 {strides = array<i32>} : memref<16x32xf32, #tpu.memory_space<vmem>>, vector<2x32xf32>,
    %c4_i32 = arith.constant 4 : i32
    %c2_i32_65 = arith.constant 2 : i32
    %153 = arith.muli %c4_i32, %c2_i32_65 : i32
    %cst_66 = arith.constant dense<0.000000e+00> : vector<2x32xf32>
    %154 = tpu.matmul %150, %12, %cst_66 {dimension_numbers = #tpu.dot_dimension_numbers<[1], [0], [0], [1], [0, 0, 1, 1], [], []>} : vector<2x32xf32>, vector<32x32xf32>, vector<2x32xf32> -> vector<2x32xf32>
    %cst_67 = arith.constant dense<0.000000e+00> : vector<2x32xf32>
    %155 = tpu.matmul %150, %13, %cst_67 {dimension_numbers = #tpu.dot_dimension_numbers<[1], [0], [0], [1], [0, 0, 1, 1], [], []>} : vector<2x32xf32>, vector<32x32xf32>, vector<2x32xf32> -> vector<2x32xf32>
    %cst_68 = arith.constant dense<0.000000e+00> : vector<2x32xf32>
    %156 = tpu.matmul %150, %14, %cst_68 {dimension_numbers = #tpu.dot_dimension_numbers<[1], [0], [0], [1], [0, 0, 1, 1], [], []>} : vector<2x32xf32>, vector<32x32xf32>, vector<2x32xf32> -> vector<2x32xf32>
    %157 = vector.broadcast %15 : vector<1x32xf32> to vector<2x32xf32>
    %158 = arith.addf %156, %157 : vector<2x32xf32>
    %159 = arith.index_cast %153 : i32 to index
    %c0_69 = arith.constant 0 : index
    %160 = vector.load %arg13[%159, %c0_69] : memref<16x32xf32, #tpu.memory_space<vmem>>, vector<2x32xf32>
    %161 = arith.addf %160, %154 : vector<2x32xf32>
    %162 = arith.negf %161 : vector<2x32xf32>
    %163 = math.exp %162 : vector<2x32xf32>
    %cst_70 = arith.constant 1.000000e+00 : f32
    %164 = vector.broadcast %cst_70 : f32 to vector<2x32xf32>
    %165 = arith.addf %164, %163 : vector<2x32xf32>
    %166 = arith.divf %164, %165 : vector<2x32xf32>
    %167 = arith.index_cast %153 : i32 to index
    %c0_71 = arith.constant 0 : index
    %168 = vector.load %arg14[%167, %c0_71] : memref<16x32xf32, #tpu.memory_space<vmem>>, vector<2x32xf32>
    %169 = arith.addf %168, %155 : vector<2x32xf32>
    %170 = arith.negf %169 : vector<2x32xf32>
    %171 = math.exp %170 : vector<2x32xf32>
    %cst_72 = arith.constant 1.000000e+00 : f32
    %172 = vector.broadcast %cst_72 : f32 to vector<2x32xf32>
    %173 = arith.addf %172, %171 : vector<2x32xf32>
    %174 = arith.divf %172, %173 : vector<2x32xf32>
    %175 = arith.index_cast %153 : i32 to index
    %c0_73 = arith.constant 0 : index
    %176 = vector.load %arg15[%175, %c0_73] : memref<16x32xf32, #tpu.memory_space<vmem>>, vector<2x32xf32>
    %177 = arith.mulf %166, %158 : vector<2x32xf32>
    %178 = arith.addf %176, %177 : vector<2x32xf32>
    %179 = math.tanh %178 : vector<2x32xf32>
    %cst_74 = arith.constant 1.000000e+00 : f32
    %180 = vector.broadcast %cst_74 : f32 to vector<2x32xf32>
    %181 = arith.subf %180, %174 : vector<2x32xf32>
    %182 = arith.mulf %181, %179 : vector<2x32xf32>
    %183 = arith.mulf %174, %150 : vector<2x32xf32>
    %184 = arith.addf %182, %183 : vector<2x32xf32>
    %185 = arith.index_cast %153 : i32 to index
    %c0_75 = arith.constant 0 : index
    %186 = vector.load %arg16[%185, %c0_75] : memref<16x32xf32, #tpu.memory_space<vmem>>, vector<2x32xf32>
    tpu.vector_store %arg16[%185, %c0_75], %184 {strides = array<i32>} : memref<16x32xf32, #tpu.memory_space<vmem>>, vector<2x32xf32>,
    %c5_i32 = arith.constant 5 : i32
    %c2_i32_76 = arith.constant 2 : i32
    %187 = arith.muli %c5_i32, %c2_i32_76 : i32
    %cst_77 = arith.constant dense<0.000000e+00> : vector<2x32xf32>
    %188 = tpu.matmul %184, %12, %cst_77 {dimension_numbers = #tpu.dot_dimension_numbers<[1], [0], [0], [1], [0, 0, 1, 1], [], []>} : vector<2x32xf32>, vector<32x32xf32>, vector<2x32xf32> -> vector<2x32xf32>
    %cst_78 = arith.constant dense<0.000000e+00> : vector<2x32xf32>
    %189 = tpu.matmul %184, %13, %cst_78 {dimension_numbers = #tpu.dot_dimension_numbers<[1], [0], [0], [1], [0, 0, 1, 1], [], []>} : vector<2x32xf32>, vector<32x32xf32>, vector<2x32xf32> -> vector<2x32xf32>
    %cst_79 = arith.constant dense<0.000000e+00> : vector<2x32xf32>
    %190 = tpu.matmul %184, %14, %cst_79 {dimension_numbers = #tpu.dot_dimension_numbers<[1], [0], [0], [1], [0, 0, 1, 1], [], []>} : vector<2x32xf32>, vector<32x32xf32>, vector<2x32xf32> -> vector<2x32xf32>
    %191 = vector.broadcast %15 : vector<1x32xf32> to vector<2x32xf32>
    %192 = arith.addf %190, %191 : vector<2x32xf32>
    %193 = arith.index_cast %187 : i32 to index
    %c0_80 = arith.constant 0 : index
    %194 = vector.load %arg13[%193, %c0_80] : memref<16x32xf32, #tpu.memory_space<vmem>>, vector<2x32xf32>
    %195 = arith.addf %194, %188 : vector<2x32xf32>
    %196 = arith.negf %195 : vector<2x32xf32>
    %197 = math.exp %196 : vector<2x32xf32>
    %cst_81 = arith.constant 1.000000e+00 : f32
    %198 = vector.broadcast %cst_81 : f32 to vector<2x32xf32>
    %199 = arith.addf %198, %197 : vector<2x32xf32>
    %200 = arith.divf %198, %199 : vector<2x32xf32>
    %201 = arith.index_cast %187 : i32 to index
    %c0_82 = arith.constant 0 : index
    %202 = vector.load %arg14[%201, %c0_82] : memref<16x32xf32, #tpu.memory_space<vmem>>, vector<2x32xf32>
    %203 = arith.addf %202, %189 : vector<2x32xf32>
    %204 = arith.negf %203 : vector<2x32xf32>
    %205 = math.exp %204 : vector<2x32xf32>
    %cst_83 = arith.constant 1.000000e+00 : f32
    %206 = vector.broadcast %cst_83 : f32 to vector<2x32xf32>
    %207 = arith.addf %206, %205 : vector<2x32xf32>
    %208 = arith.divf %206, %207 : vector<2x32xf32>
    %209 = arith.index_cast %187 : i32 to index
    %c0_84 = arith.constant 0 : index
    %210 = vector.load %arg15[%209, %c0_84] : memref<16x32xf32, #tpu.memory_space<vmem>>, vector<2x32xf32>
    %211 = arith.mulf %200, %192 : vector<2x32xf32>
    %212 = arith.addf %210, %211 : vector<2x32xf32>
    %213 = math.tanh %212 : vector<2x32xf32>
    %cst_85 = arith.constant 1.000000e+00 : f32
    %214 = vector.broadcast %cst_85 : f32 to vector<2x32xf32>
    %215 = arith.subf %214, %208 : vector<2x32xf32>
    %216 = arith.mulf %215, %213 : vector<2x32xf32>
    %217 = arith.mulf %208, %184 : vector<2x32xf32>
    %218 = arith.addf %216, %217 : vector<2x32xf32>
    %219 = arith.index_cast %187 : i32 to index
    %c0_86 = arith.constant 0 : index
    %220 = vector.load %arg16[%219, %c0_86] : memref<16x32xf32, #tpu.memory_space<vmem>>, vector<2x32xf32>
    tpu.vector_store %arg16[%219, %c0_86], %218 {strides = array<i32>} : memref<16x32xf32, #tpu.memory_space<vmem>>, vector<2x32xf32>,
    %c6_i32 = arith.constant 6 : i32
    %c2_i32_87 = arith.constant 2 : i32
    %221 = arith.muli %c6_i32, %c2_i32_87 : i32
    %cst_88 = arith.constant dense<0.000000e+00> : vector<2x32xf32>
    %222 = tpu.matmul %218, %12, %cst_88 {dimension_numbers = #tpu.dot_dimension_numbers<[1], [0], [0], [1], [0, 0, 1, 1], [], []>} : vector<2x32xf32>, vector<32x32xf32>, vector<2x32xf32> -> vector<2x32xf32>
    %cst_89 = arith.constant dense<0.000000e+00> : vector<2x32xf32>
    %223 = tpu.matmul %218, %13, %cst_89 {dimension_numbers = #tpu.dot_dimension_numbers<[1], [0], [0], [1], [0, 0, 1, 1], [], []>} : vector<2x32xf32>, vector<32x32xf32>, vector<2x32xf32> -> vector<2x32xf32>
    %cst_90 = arith.constant dense<0.000000e+00> : vector<2x32xf32>
    %224 = tpu.matmul %218, %14, %cst_90 {dimension_numbers = #tpu.dot_dimension_numbers<[1], [0], [0], [1], [0, 0, 1, 1], [], []>} : vector<2x32xf32>, vector<32x32xf32>, vector<2x32xf32> -> vector<2x32xf32>
    %225 = vector.broadcast %15 : vector<1x32xf32> to vector<2x32xf32>
    %226 = arith.addf %224, %225 : vector<2x32xf32>
    %227 = arith.index_cast %221 : i32 to index
    %c0_91 = arith.constant 0 : index
    %228 = vector.load %arg13[%227, %c0_91] : memref<16x32xf32, #tpu.memory_space<vmem>>, vector<2x32xf32>
    %229 = arith.addf %228, %222 : vector<2x32xf32>
    %230 = arith.negf %229 : vector<2x32xf32>
    %231 = math.exp %230 : vector<2x32xf32>
    %cst_92 = arith.constant 1.000000e+00 : f32
    %232 = vector.broadcast %cst_92 : f32 to vector<2x32xf32>
    %233 = arith.addf %232, %231 : vector<2x32xf32>
    %234 = arith.divf %232, %233 : vector<2x32xf32>
    %235 = arith.index_cast %221 : i32 to index
    %c0_93 = arith.constant 0 : index
    %236 = vector.load %arg14[%235, %c0_93] : memref<16x32xf32, #tpu.memory_space<vmem>>, vector<2x32xf32>
    %237 = arith.addf %236, %223 : vector<2x32xf32>
    %238 = arith.negf %237 : vector<2x32xf32>
    %239 = math.exp %238 : vector<2x32xf32>
    %cst_94 = arith.constant 1.000000e+00 : f32
    %240 = vector.broadcast %cst_94 : f32 to vector<2x32xf32>
    %241 = arith.addf %240, %239 : vector<2x32xf32>
    %242 = arith.divf %240, %241 : vector<2x32xf32>
    %243 = arith.index_cast %221 : i32 to index
    %c0_95 = arith.constant 0 : index
    %244 = vector.load %arg15[%243, %c0_95] : memref<16x32xf32, #tpu.memory_space<vmem>>, vector<2x32xf32>
    %245 = arith.mulf %234, %226 : vector<2x32xf32>
    %246 = arith.addf %244, %245 : vector<2x32xf32>
    %247 = math.tanh %246 : vector<2x32xf32>
    %cst_96 = arith.constant 1.000000e+00 : f32
    %248 = vector.broadcast %cst_96 : f32 to vector<2x32xf32>
    %249 = arith.subf %248, %242 : vector<2x32xf32>
    %250 = arith.mulf %249, %247 : vector<2x32xf32>
    %251 = arith.mulf %242, %218 : vector<2x32xf32>
    %252 = arith.addf %250, %251 : vector<2x32xf32>
    %253 = arith.index_cast %221 : i32 to index
    %c0_97 = arith.constant 0 : index
    %254 = vector.load %arg16[%253, %c0_97] : memref<16x32xf32, #tpu.memory_space<vmem>>, vector<2x32xf32>
    tpu.vector_store %arg16[%253, %c0_97], %252 {strides = array<i32>} : memref<16x32xf32, #tpu.memory_space<vmem>>, vector<2x32xf32>,
    %c7_i32 = arith.constant 7 : i32
    %c2_i32_98 = arith.constant 2 : i32
    %255 = arith.muli %c7_i32, %c2_i32_98 : i32
    %cst_99 = arith.constant dense<0.000000e+00> : vector<2x32xf32>
    %256 = tpu.matmul %252, %12, %cst_99 {dimension_numbers = #tpu.dot_dimension_numbers<[1], [0], [0], [1], [0, 0, 1, 1], [], []>} : vector<2x32xf32>, vector<32x32xf32>, vector<2x32xf32> -> vector<2x32xf32>
    %cst_100 = arith.constant dense<0.000000e+00> : vector<2x32xf32>
    %257 = tpu.matmul %252, %13, %cst_100 {dimension_numbers = #tpu.dot_dimension_numbers<[1], [0], [0], [1], [0, 0, 1, 1], [], []>} : vector<2x32xf32>, vector<32x32xf32>, vector<2x32xf32> -> vector<2x32xf32>
    %cst_101 = arith.constant dense<0.000000e+00> : vector<2x32xf32>
    %258 = tpu.matmul %252, %14, %cst_101 {dimension_numbers = #tpu.dot_dimension_numbers<[1], [0], [0], [1], [0, 0, 1, 1], [], []>} : vector<2x32xf32>, vector<32x32xf32>, vector<2x32xf32> -> vector<2x32xf32>
    %259 = vector.broadcast %15 : vector<1x32xf32> to vector<2x32xf32>
    %260 = arith.addf %258, %259 : vector<2x32xf32>
    %261 = arith.index_cast %255 : i32 to index
    %c0_102 = arith.constant 0 : index
    %262 = vector.load %arg13[%261, %c0_102] : memref<16x32xf32, #tpu.memory_space<vmem>>, vector<2x32xf32>
    %263 = arith.addf %262, %256 : vector<2x32xf32>
    %264 = arith.negf %263 : vector<2x32xf32>
    %265 = math.exp %264 : vector<2x32xf32>
    %cst_103 = arith.constant 1.000000e+00 : f32
    %266 = vector.broadcast %cst_103 : f32 to vector<2x32xf32>
    %267 = arith.addf %266, %265 : vector<2x32xf32>
    %268 = arith.divf %266, %267 : vector<2x32xf32>
    %269 = arith.index_cast %255 : i32 to index
    %c0_104 = arith.constant 0 : index
    %270 = vector.load %arg14[%269, %c0_104] : memref<16x32xf32, #tpu.memory_space<vmem>>, vector<2x32xf32>
    %271 = arith.addf %270, %257 : vector<2x32xf32>
    %272 = arith.negf %271 : vector<2x32xf32>
    %273 = math.exp %272 : vector<2x32xf32>
    %cst_105 = arith.constant 1.000000e+00 : f32
    %274 = vector.broadcast %cst_105 : f32 to vector<2x32xf32>
    %275 = arith.addf %274, %273 : vector<2x32xf32>
    %276 = arith.divf %274, %275 : vector<2x32xf32>
    %277 = arith.index_cast %255 : i32 to index
    %c0_106 = arith.constant 0 : index
    %278 = vector.load %arg15[%277, %c0_106] : memref<16x32xf32, #tpu.memory_space<vmem>>, vector<2x32xf32>
    %279 = arith.mulf %268, %260 : vector<2x32xf32>
    %280 = arith.addf %278, %279 : vector<2x32xf32>
    %281 = math.tanh %280 : vector<2x32xf32>
    %cst_107 = arith.constant 1.000000e+00 : f32
    %282 = vector.broadcast %cst_107 : f32 to vector<2x32xf32>
    %283 = arith.subf %282, %276 : vector<2x32xf32>
    %284 = arith.mulf %283, %281 : vector<2x32xf32>
    %285 = arith.mulf %276, %252 : vector<2x32xf32>
    %286 = arith.addf %284, %285 : vector<2x32xf32>
    %287 = arith.index_cast %255 : i32 to index
    %c0_108 = arith.constant 0 : index
    %288 = vector.load %arg16[%287, %c0_108] : memref<16x32xf32, #tpu.memory_space<vmem>>, vector<2x32xf32>
    tpu.vector_store %arg16[%287, %c0_108], %286 {strides = array<i32>} : memref<16x32xf32, #tpu.memory_space<vmem>>, vector<2x32xf32>,
    %c8_i32 = arith.constant 8 : i32
    %c0_109 = arith.constant 0 : index
    %c0_110 = arith.constant 0 : index
    %289 = vector.load %arg16[%c0_109, %c0_110] : memref<16x32xf32, #tpu.memory_space<vmem>>, vector<16x32xf32>
    %c0_111 = arith.constant 0 : index
    %c0_112 = arith.constant 0 : index
    %290 = vector.load %arg9[%c0_111, %c0_112] : memref<32x16xf32, #tpu.memory_space<vmem>>, vector<32x16xf32>
    %cst_113 = arith.constant dense<0.000000e+00> : vector<16x16xf32>
    %291 = tpu.matmul %289, %290, %cst_113 {dimension_numbers = #tpu.dot_dimension_numbers<[1], [0], [0], [1], [0, 0, 1, 1], [], []>} : vector<16x32xf32>, vector<32x16xf32>, vector<16x16xf32> -> vector<16x16xf32>
    %c0_114 = arith.constant 0 : index
    %c0_115 = arith.constant 0 : index
    %292 = vector.load %arg10[%c0_114, %c0_115] : memref<1x16xf32, #tpu.memory_space<vmem>>, vector<1x16xf32>
    %293 = vector.broadcast %292 : vector<1x16xf32> to vector<16x16xf32>
    %294 = arith.addf %291, %293 : vector<16x16xf32>
    %295 = arith.negf %294 : vector<16x16xf32>
    %296 = math.exp %295 : vector<16x16xf32>
    %cst_116 = arith.constant 1.000000e+00 : f32
    %297 = vector.broadcast %cst_116 : f32 to vector<16x16xf32>
    %298 = arith.addf %297, %296 : vector<16x16xf32>
    %299 = arith.divf %297, %298 : vector<16x16xf32>
    %c0_117 = arith.constant 0 : index
    %c0_118 = arith.constant 0 : index
    %300 = vector.load %arg11[%c0_117, %c0_118] : memref<16x16xf32, #tpu.memory_space<vmem>>, vector<16x16xf32>
    tpu.vector_store %arg11[%c0_117, %c0_118], %299 {strides = array<i32>} : memref<16x16xf32, #tpu.memory_space<vmem>>, vector<16x16xf32>,
    %c0_119 = arith.constant 0 : index
    %c0_120 = arith.constant 0 : index
    %301 = vector.load %arg12[%c0_119, %c0_120] : memref<2x32xf32, #tpu.memory_space<vmem>>, vector<2x32xf32>
    tpu.vector_store %arg12[%c0_119, %c0_120], %286 {strides = array<i32>} : memref<2x32xf32, #tpu.memory_space<vmem>>, vector<2x32xf32>,
    return
  }
  func.func @transform_0(%arg0: i32) -> (i32, i32) {
    %c0_i32 = arith.constant 0 : i32
    %c0_i32_0 = arith.constant 0 : i32
    %c0_i32_1 = arith.constant 0 : i32
    return %c0_i32, %c0_i32_0 : i32, i32
  }
  func.func @transform_1(%arg0: i32) -> (i32, i32) {
    %c0_i32 = arith.constant 0 : i32
    %c0_i32_0 = arith.constant 0 : i32
    %c0_i32_1 = arith.constant 0 : i32
    return %c0_i32, %c0_i32_0 : i32, i32
  }
  func.func @transform_2(%arg0: i32) -> (i32, i32) {
    %c0_i32 = arith.constant 0 : i32
    %c0_i32_0 = arith.constant 0 : i32
    %c0_i32_1 = arith.constant 0 : i32
    return %c0_i32, %c0_i32_0 : i32, i32
  }
  func.func @transform_3(%arg0: i32) -> (i32, i32) {
    %c0_i32 = arith.constant 0 : i32
    %c0_i32_0 = arith.constant 0 : i32
    %c0_i32_1 = arith.constant 0 : i32
    return %c0_i32, %c0_i32_0 : i32, i32
  }
  func.func @transform_4(%arg0: i32) -> (i32, i32) {
    %c0_i32 = arith.constant 0 : i32
    %c0_i32_0 = arith.constant 0 : i32
    %c0_i32_1 = arith.constant 0 : i32
    return %c0_i32, %c0_i32_0 : i32, i32
  }
  func.func @transform_5(%arg0: i32) -> (i32, i32) {
    %c0_i32 = arith.constant 0 : i32
    %c0_i32_0 = arith.constant 0 : i32
    %c0_i32_1 = arith.constant 0 : i32
    return %c0_i32, %c0_i32_0 : i32, i32
  }
  func.func @transform_6(%arg0: i32) -> (i32, i32) {
    %c0_i32 = arith.constant 0 : i32
    %c0_i32_0 = arith.constant 0 : i32
    %c0_i32_1 = arith.constant 0 : i32
    return %c0_i32, %c0_i32_0 : i32, i32
  }
  func.func @transform_7(%arg0: i32) -> (i32, i32) {
    %c0_i32 = arith.constant 0 : i32
    %c0_i32_0 = arith.constant 0 : i32
    %c0_i32_1 = arith.constant 0 : i32
    return %c0_i32, %c0_i32_0 : i32, i32
  }
  func.func @transform_8(%arg0: i32) -> (i32, i32) {
    %c0_i32 = arith.constant 0 : i32
    %c0_i32_0 = arith.constant 0 : i32
    %c0_i32_1 = arith.constant 0 : i32
    return %c0_i32, %c0_i32_0 : i32, i32
  }
  func.func @transform_9(%arg0: i32) -> (i32, i32) {
    %c0_i32 = arith.constant 0 : i32
    %c0_i32_0 = arith.constant 0 : i32
    %c0_i32_1 = arith.constant 0 : i32
    return %c0_i32, %c0_i32_0 : i32, i32
  }
  func.func @transform_10(%arg0: i32) -> (i32, i32) {
    %c0_i32 = arith.constant 0 : i32
    %c0_i32_0 = arith.constant 0 : i32
    %c0_i32_1 = arith.constant 0 : i32
    return %c0_i32, %c0_i32_0 : i32, i32
  }
  func.func @transform_11(%arg0: i32) -> (i32, i32) {
    %c0_i32 = arith.constant 0 : i32
    %c0_i32_0 = arith.constant 0 : i32
    %c0_i32_1 = arith.constant 0 : i32
    return %c0_i32, %c0_i32_0 : i32, i32
  }
}

</mosaic_0001>

<bundles_post_ra>
// kernel: tpu_custom_call.1
= control target key start
LH: loop header
LB: loop body
LE: loop exit
PB: predicated region body
PF: predicated region fallthrough
CT: control target
= control target key end

     0   :  { %17 = vsyncpa [#allocation7], 0  ;;  %s3566_s0 = inlined_call_operand.hbm [shape: f32[16,16], index: 0, kind: input, shape index: {}]   ;;  %s3567_s1 = inlined_call_operand.vmem [shape: f32[2,32], index: 1, kind: input, shape index: {}]   ;;  %s3568_s2 = inlined_call_operand.hbm [shape: f32[16,96], index: 2, kind: input, shape index: {}]   ;;  %s3569_s3 = inlined_call_operand.hbm [shape: f32[1,96], index: 3, kind: input, shape index: {}]   ;;  %s3570_s4 = inlined_call_operand.vmem [shape: f32[32,32], index: 4, kind: input, shape index: {}]   ;;  %s3571_s5 = inlined_call_operand.vmem [shape: f32[32,32], index: 5, kind: input, shape index: {}]   ;;  %s3572_s6 = inlined_call_operand.hbm [shape: f32[32,32], index: 6, kind: input, shape index: {}]   ;;  %s3573_s7 = inlined_call_operand.vmem [shape: f32[1,32], index: 7, kind: input, shape index: {}]   ;;  %s3574_s8 = inlined_call_operand.vmem [shape: f32[32,16], index: 8, kind: input, shape index: {}]   ;;  %s3575_s9 = inlined_call_operand.vmem [shape: f32[1,16], index: 9, kind: input, shape index: {}]   ;;  %s3576_s10 = inlined_call_operand.hbm [shape: f32[16,16], index: 10, kind: output, shape index: {0}]   ;;  %s3577_s11 = inlined_call_operand.hbm [shape: f32[2,32], index: 11, kind: output, shape index: {1}]  }
   0x1   :  { %18 = vsyncpa [#allocation10], 0 }
   0x2   :  { %19 = vsyncpa [#allocation13], 0 }
   0x3   :  { %20 = vsyncpa [#allocation8], 0 }
   0x4   :  { %21 = vsyncpa [#allocation16], 0  ;;  %s3133_s17 = smov [#allocation9]   ;;  %s3134_s19 = smov [#allocation6]  }
   0x5   :  { %s41_s18 = sshll.u32 %s3133_s17, 4  ;;  %s27_s20 = sshll.u32 %s3134_s19, 4  ;;  %s42_s18 = int_to_ptr.vmem [resolvable:$true] %s41_s18  ;;  %s3206_s20 = int_to_ptr.vmem [resolvable:$true] %s27_s20 }
   0x6   :  { %s2991_s23 = scalar_lea.hbm %s3568_s2, 256 }
   0x7   :  { %p2992_p0 = scmp.ne.s32.totalorder %s3568_s2, %s2991_s23  ;;  %p2995_p1 = scmp.lt.u32.totalorder %s2991_s23, %s3568_s2 }
   0x9   :  { %p2997_p2 = pnand %p2995_p1, %p2992_p0 }
   0xb   :  { %3000 = shalt.err (!%p2997_p2)
}
   0xc   :  { %s3001_s28 = scalar_lea.vmem %s42_s18, 256  ;;  %p3006_p4 = scmp.lt.s32.totalorder %s42_s18, %s42_s18 }
   0xd   :  { %p3002_p3 = scmp.ne.s32.totalorder %s42_s18, %s3001_s28  ;;  %p3007_p5 = scmp.lt.s32.totalorder %s3001_s28, %s3001_s28 }
   0xf   :  { %p3008_p6 = por %p3007_p5, %p3006_p4 }
  0x11   :  { %p3009_p7 = pnand %p3008_p6, %p3002_p3 }
  0x13   :  { %3012 = shalt.err (!%p3009_p7)
}
  0x14   :  { %s3135_s29 = smov 128   ;;  %s3136_s30 = smov 8  }
  0x15   :  { %47 = dma.hbm_to_vmem [thread:$0]  %s3568_s2, 256, %s42_s18, [#allocation10], %s3135_s29, %s3135_s29, %s3136_s30  }
  0x16   :  { %s3013_s16 = scalar_lea.hbm %s3566_s0, 256 }
  0x17   :  { %p3014_p8 = scmp.ne.s32.totalorder %s3566_s0, %s3013_s16  ;;  %p3017_p9 = scmp.lt.u32.totalorder %s3013_s16, %s3566_s0 }
  0x19   :  { %p3019_p10 = pnand %p3017_p9, %p3014_p8 }
  0x1b   :  { %3022 = shalt.err (!%p3019_p10)
}
  0x1c   :  { %s3023_s23 = scalar_lea.vmem %s3206_s20, 256  ;;  %p3028_p12 = scmp.lt.s32.totalorder %s3206_s20, %s3206_s20 }
  0x1d   :  { %p3024_p11 = scmp.ne.s32.totalorder %s3206_s20, %s3023_s23  ;;  %p3029_p13 = scmp.lt.s32.totalorder %s3023_s23, %s3023_s23 }
  0x1f   :  { %p3030_p0 = por %p3029_p13, %p3028_p12 }
  0x21   :  { %p3031_p1 = pnand %p3030_p0, %p3024_p11 }
  0x23   :  { %3034 = shalt.err (!%p3031_p1)
}
  0x24   :  { %33 = dma.hbm_to_vmem [thread:$0]  %s3566_s0, 256, %s3206_s20, [#allocation7], %s3135_s29, %s3135_s29, %s3136_s30  }
  0x25   :  { %s3137_s24 = smov [#allocation11]   ;;  %s3138_s26 = smov [#allocation12]  }
  0x26   :  { %s54_s25 = sshll.u32 %s3137_s24, 4  ;;  %s67_s27 = sshll.u32 %s3138_s26, 4  ;;  %s55_s25 = int_to_ptr.vmem [resolvable:$true] %s54_s25  ;;  %s3243_s27 = int_to_ptr.vmem [resolvable:$true] %s67_s27 }
  0x27   :  { %s3035_s13 = scalar_lea.hbm %s3569_s3, 16 }
  0x28   :  { %p3036_p2 = scmp.ne.s32.totalorder %s3569_s3, %s3035_s13  ;;  %p3039_p3 = scmp.lt.u32.totalorder %s3035_s13, %s3569_s3 }
  0x2a   :  { %p3041_p4 = pnand %p3039_p3, %p3036_p2 }
  0x2c   :  { %3044 = shalt.err (!%p3041_p4)
}
  0x2d   :  { %s3045_s0 = scalar_lea.vmem %s55_s25, 16  ;;  %s3049_s20 = scalar_lea.vmem %s55_s25, 32 }
  0x2e   :  { %p3046_p5 = scmp.ne.s32.totalorder %s55_s25, %s3045_s0  ;;  %p3050_p6 = scmp.lt.s32.totalorder %s55_s25, %s55_s25 }
  0x2f   :  { %p3051_p7 = scmp.lt.s32.totalorder %s3049_s20, %s3045_s0 }
  0x31   :  { %p3052_p8 = por %p3051_p7, %p3050_p6 }
  0x33   :  { %p3053_p9 = pnand %p3052_p8, %p3046_p5 }
  0x35   :  { %3056 = shalt.err (!%p3053_p9)
}
  0x36   :  { %57 = dma.hbm_to_vmem [thread:$0]  %s3569_s3, 16, %s55_s25, [#allocation10]  }
  0x37   :  { %s3057_s2 = scalar_lea.hbm %s3572_s6, 512 }
  0x38   :  { %p3058_p10 = scmp.ne.s32.totalorder %s3572_s6, %s3057_s2  ;;  %p3061_p11 = scmp.lt.u32.totalorder %s3057_s2, %s3572_s6 }
  0x3a   :  { %p3063_p12 = pnand %p3061_p11, %p3058_p10 }
  0x3c   :  { %3066 = shalt.err (!%p3063_p12)
}
  0x3d   :  { %s3067_s12 = scalar_lea.vmem %s3243_s27, 512  ;;  %p3072_p0 = scmp.lt.s32.totalorder %s3243_s27, %s3243_s27 }
  0x3e   :  { %p3068_p13 = scmp.ne.s32.totalorder %s3243_s27, %s3067_s12  ;;  %p3073_p1 = scmp.lt.s32.totalorder %s3067_s12, %s3067_s12 }
  0x40   :  { %p3074_p2 = por %p3073_p1, %p3072_p0 }
  0x42   :  { %p3075_p3 = pnand %p3074_p2, %p3068_p13 }
  0x44   :  { %3078 = shalt.err (!%p3075_p3)
}
  0x45   :  { %73 = dma.hbm_to_vmem [thread:$0]  %s3572_s6, 512, %s3243_s27, [#allocation13], %s3135_s29, %s3135_s29, %s3136_s30  }
  0x46   :  { %3123 = dma.done.wait [#allocation7], 256  }
  0x47   :  { %3124 = vsyncadd [#allocation7], 4294967040 }
  0x48   :  { %3125 = dma.done.wait [#allocation10], 272  }
  0x49   :  { %3126 = vsyncadd [#allocation10], 4294967024 }
  0x4a   :  { %3127 = dma.done.wait [#allocation13], 512  }
  0x4b   :  { %3128 = vsyncadd [#allocation13], 4294966784  ;;  %v3139_v0 = vmov 0.0|0.0   ;;  %vm3140_vm0 = vmmov 0   ;;  %v3141_v1 = vmov 0.0   ;;  %vm103_vm1 = vcmask 130048  }
  0x4c   :  { %2738 = vmatprep.subr.bf16.mxu1 %v3139_v0  ;;  %2467 = vmatprep.mubr.msk.f32.mxu1 %vm3140_vm0, %v3141_v1  ;;  %v94_v2 = vld [vmem:[#allocation9] sm:$0xff]  ;;  %v95_v3 = vld [vmem:[#allocation9 + $0x8] sm:$0xff]  ;;  %v92_v4 = vld [vmem:[#allocation6] sm:$0xff]  ;;  %vm185_vm2 = vcmask 261120   ;;  %vm463_vm3 = vcmask 254976  }
  0x4d   :  { %v2734_v5 = vpack.c.bf16 %v95_v3, %v94_v2  ;;  %2456 = vmatprep.mubr.msk.f32.mxu0 %vm103_vm1, %v92_v4  ;;  %v206_v6 = vld [vmem:[%s3570_s4] sm:$0xff]  ;;  %v207_v7 = vld [vmem:[%s3570_s4 + $0x8] sm:$0xff]  ;;  %v208_v9 = vld [vmem:[%s3570_s4 + $0x10] sm:$0xff] }
  0x4e   :  { %v3287_v8 = vpack.c.bf16 %v207_v7, %v206_v6  ;;  %v209_v10 = vld [vmem:[%s3570_s4 + $0x18] sm:$0xff]  ;;  %v93_v11 = vld [vmem:[#allocation6 + $0x8] sm:$0xff]  ;;  %v210_v13 = vld [vmem:[%s3571_s5] sm:$0xff] }
  0x4f   :  { %2735 = vmatprep.subr.bf16.mxu0 %v2734_v5  ;;  %v3296_v12 = vpack.c.bf16 %v209_v10, %v208_v9  ;;  %v211_v14 = vld [vmem:[%s3571_s5 + $0x8] sm:$0xff]  ;;  %v212_v18 = vld [vmem:[%s3571_s5 + $0x10] sm:$0xff]  ;;  %v213_v19 = vld [vmem:[%s3571_s5 + $0x18] sm:$0xff]  ;;  %s3143_s5 = smov 64  }
  0x50   :  { %2737 = vmatpush3.bf16.msra.mxu0 %v2734_v5  ;;  %2740 = vmatpush3.bf16.msra.mxu1 %v3287_v8  ;;  %v214_v15 = vld [vmem:[#allocation12] sm:$0xff]  ;;  %v215_v16 = vld [vmem:[#allocation12 + $0x8] sm:$0xff]  ;;  %v3306_v17 = vpack.c.bf16 %v211_v14, %v210_v13  ;;  %v3319_v20 = vld [vmem:[%s3567_s1] sm:$0x3]  ;;  %v3326_v24 = vpack.c.bf16 %v213_v19, %v212_v18  ;;  %s3142_s1 = smov 96  }
  0x51   :  { %2741 = vmatprep.subr.bf16.mxu1 %v3139_v0  ;;  %2744 = vmatprep.subr.bf16.mxu0 %v3139_v0  ;;  %v3321_v21 = vpack.c.bf16 %v215_v16, %v214_v15  ;;  %v216_v22 = vld [vmem:[#allocation12 + $0x10] sm:$0xff]  ;;  %v217_v23 = vld [vmem:[#allocation12 + $0x18] sm:$0xff] }
  0x52   :  { %v3333_v25 = vpack.c.bf16 %v217_v23, %v216_v22  ;;  %v2273_v26 = vld [vmem:[#allocation11] ss:$0 sm:$0xff] }
  0x53   :  { %2457 = vmatmul.mubr.msk.f32.vlgmr.msra.gmra.mrb[0].mxu0 %vm103_vm1, %v93_v11  ;;  %v3363_v42 = vld [vmem:[%s3573_s7] ss:$0 sm:$0xff] }
  0x54   :  { %2743 = vmatpush3.bf16.msra.mxu1 %v3296_v12  ;;  %2746 = vmatpush3.bf16.msra.mxu0 %v3306_v17 }
  0x55   :  { %2750 = vmatprep.subr.bf16.mxu1 %v3139_v0  ;;  %2747 = vmatprep.subr.bf16.mxu0 %v3139_v0 }
  0x56   :  { %2478 = vmatprep.mubr.msk.f32.mxu0 %vm3140_vm0, %v3141_v1 }
  0x57   :  { %2468 = vmatmul.mubr.msk.f32.vlgmr.msra.gmra.mrb[0].mxu1 %vm185_vm2, %v3319_v20 }
  0x58   :  { %2752 = vmatpush3.bf16.msra.mxu1 %v3321_v21  ;;  %2489 = vmatprep.mubr.msk.f32.mxu1 %vm3140_vm0, %v3141_v1 }
  0x59   :  { %2753 = vmatprep.subr.bf16.mxu1 %v3139_v0  ;;  %2749 = vmatpush3.bf16.msra.mxu0 %v3326_v24 }
  0x5a   :  { %2756 = vmatprep.subr.bf16.mxu0 %v3139_v0 }
  0x5c   :  { %2755 = vmatpush3.bf16.msra.mxu1 %v3333_v25  ;;  %2479 = vmatmul.mubr.msk.f32.vlgmr.msra.gmra.mrb[2].mxu0 %vm185_vm2, %v3319_v20 }
  0x5d   :  { %2758 = vmatpush3.bf16.msra.mxu0 %v3287_v8  ;;  %2762 = vmatprep.subr.bf16.mxu1 %v3139_v0 }
  0x5e   :  { %2759 = vmatprep.subr.bf16.mxu0 %v3139_v0  ;;  %2500 = vmatprep.mubr.msk.f32.mxu0 %vm3140_vm0, %v3141_v1 }
  0x5f   :  { %2490 = vmatmul.mubr.msk.f32.vlgmr.msra.gmra.mrb[2].mxu1 %vm185_vm2, %v3319_v20 }
  0x60   :  { %2764 = vmatpush3.bf16.msra.mxu1 %v3306_v17  ;;  %2511 = vmatprep.mubr.msk.f32.mxu1 %vm3140_vm0, %v3141_v1 }
  0x61   :  { %2761 = vmatpush3.bf16.msra.mxu0 %v3296_v12  ;;  %2765 = vmatprep.subr.bf16.mxu1 %v3139_v0 }
  0x62   :  { %2768 = vmatprep.subr.bf16.mxu0 %v3139_v0 }
  0x64   :  { %2767 = vmatpush3.bf16.msra.mxu1 %v3326_v24 }
  0x65   :  { %2774 = vmatprep.subr.bf16.mxu1 %v3139_v0 }
 0x126   :  { %v2458_v27 = vpop.f32.mrb[0].mxu0 }
 0x127   :  { %v182_v28 = vadd.f32 %v2458_v27, %v2273_v26  ;;  %v176_v29 = vpop.f32.mrb[1].mxu0 }
 0x128   :  { %v177_v30 = vadd.f32 %v2273_v26, %v176_v29 }
 0x129   :  { %187 = vst.msk [vmem:[#allocation2 + $0x8] sm:$0xff] %vm185_vm2, %v182_v28  ;;  %192 = vrot.lane.b32.xlu1 %v182_v28, %s3142_s1 }
 0x12a   :  { %186 = vst.msk [vmem:[#allocation2] sm:$0xff] %vm185_vm2, %v177_v30  ;;  %190 = vrot.lane.b32.xlu0 %v177_v30, %s3142_s1  ;;  %v289_v31 = vpop.f32.mrb[0].mxu1 }
 0x12b   :  { %v2469_v32 = vpop.f32.mrb[1].mxu1 }
 0x12d   :  { %200 = vrot.lane.b32.xlu1 %v182_v28, %s3143_s5 }
 0x12e   :  { %198 = vrot.lane.b32.xlu0 %v177_v30, %s3143_s5 }
 0x12f   :  { %v359_v33 = vpop.f32.mrb[2].mxu0 }
 0x130   :  { %v2480_v34 = vpop.f32.mrb[3].mxu0 }
 0x131   :  { %v439_v35 = vld [vmem:[#allocation2] sm:$0x3]  ;;  %v678_v2 = vld [vmem:[#allocation2 + $0x2] sm:$0x3] }
 0x132   :  { %v440_v36 = vadd.f32 %v439_v35, %v289_v31  ;;  %v435_v37 = vpop.f32.mrb[2].mxu1  ;;  %v916_v35 = vld [vmem:[#allocation2 + $0x4] sm:$0x3] }
 0x133   :  { %v2491_v38 = vpop.f32.mrb[3].mxu1  ;;  %v436_v43 = vadd.f32 %v3363_v42, %v435_v37 }
 0x134   :  { %v2280_v39 = vmul.f32 -1.442695, %v440_v36 }
 0x136   :  { %2903 = vpow2.f32 %v2280_v39 }
 0x140   :  { %v2904_v40 = vpop.eup %2903 }
 0x141   :  { %v444_v41 = vadd.f32 1.0, %v2904_v40 }
 0x143   :  { %2905 = vrcp.f32 %v444_v41 }
 0x14d   :  { %v2906_v44 = vpop.eup %2905 }
 0x14e   :  { %v456_v45 = vmul.f32 %v2906_v44, %v436_v43 }
 0x19b   :  { %v193_v46 = vpop.permute.xlu1 %192 }
 0x19c   :  { %197 = vst.msk [vmem:[#allocation3 + $0x8] sm:$0xff] %vm185_vm2, %v193_v46  ;;  %v191_v47 = vpop.permute.xlu0 %190 }
 0x19d   :  { %196 = vst.msk [vmem:[#allocation3] sm:$0xff] %vm185_vm2, %v191_v47 }
 0x19f   :  { %v201_v48 = vpop.permute.xlu1 %200 }
 0x1a0   :  { %205 = vst.msk [vmem:[#allocation4 + $0x8] sm:$0xff] %vm185_vm2, %v201_v48  ;;  %v199_v49 = vpop.permute.xlu0 %198 }
 0x1a1   :  { %204 = vst.msk [vmem:[#allocation4] sm:$0xff] %vm185_vm2, %v199_v49 }
 0x1a4   :  { %v447_v50 = vld [vmem:[#allocation3] sm:$0x3]  ;;  %v686_v9 = vld [vmem:[#allocation3 + $0x2] sm:$0x3]  ;;  %v924_v41 = vld [vmem:[#allocation3 + $0x4] sm:$0x3] }
 0x1a5   :  { %v448_v51 = vadd.f32 %v447_v50, %v359_v33 }
 0x1a7   :  { %v2281_v52 = vmul.f32 -1.442695, %v448_v51 }
 0x1a8   :  { %v455_v53 = vld [vmem:[#allocation4] sm:$0x3]  ;;  %v694_v26 = vld [vmem:[#allocation4 + $0x2] sm:$0x3] }
 0x1a9   :  { %2907 = vpow2.f32 %v2281_v52  ;;  %v457_v56 = vadd.f32 %v456_v45, %v455_v53 }
 0x1b3   :  { %v2908_v54 = vpop.eup %2907 }
 0x1b4   :  { %v452_v55 = vadd.f32 1.0, %v2908_v54  ;;  %v932_v54 = vld [vmem:[#allocation4 + $0x4] sm:$0x3] }
 0x1b6   :  { %2909 = vrcp.f32 %v452_v55 }
 0x1b7   :  { %2911 = vtanh.f32 %v457_v56 }
 0x1c0   :  { %v2910_v57 = vpop.eup %2909 }
 0x1c1   :  { %v459_v58 = vsub.f32 1.0, %v2910_v57  ;;  %v2912_v59 = vpop.eup %2911  ;;  %v461_v61 = vmul.f32 %v2910_v57, %v3319_v20 }
 0x1c3   :  { %v460_v60 = vmul.f32 %v2912_v59, %v459_v58 }
 0x1c5   :  { %v462_v62 = vadd.f32 %v461_v61, %v460_v60 }
 0x1c7   :  { %464 = vst.msk [vmem:[#allocation5] sm:$0x3] %vm463_vm3, %v462_v62  ;;  %2501 = vmatmul.mubr.msk.f32.vlgmr.msra.gmra.mrb[4].mxu0 %vm185_vm2, %v462_v62  ;;  %2512 = vmatmul.mubr.msk.f32.vlgmr.msra.gmra.mrb[4].mxu1 %vm185_vm2, %v462_v62 }
 0x1c8   :  { %2770 = vmatpush3.bf16.msra.mxu0 %v3321_v21  ;;  %2522 = vmatprep.mubr.msk.f32.mxu0 %vm3140_vm0, %v3141_v1 }
 0x1c9   :  { %2771 = vmatprep.subr.bf16.mxu0 %v3139_v0  ;;  %2776 = vmatpush3.bf16.msra.mxu1 %v3287_v8 }
 0x1ca   :  { %2777 = vmatprep.subr.bf16.mxu1 %v3139_v0  ;;  %2533 = vmatprep.mubr.msk.f32.mxu1 %vm3140_vm0, %v3141_v1 }
 0x1cc   :  { %2773 = vmatpush3.bf16.msra.mxu0 %v3333_v25 }
 0x1cd   :  { %2780 = vmatprep.subr.bf16.mxu0 %v3139_v0  ;;  %2779 = vmatpush3.bf16.msra.mxu1 %v3296_v12 }
 0x1ce   :  { %2786 = vmatprep.subr.bf16.mxu1 %v3139_v0 }
 0x1cf   :  { %2523 = vmatmul.mubr.msk.f32.vlgmr.msra.gmra.mrb[6].mxu0 %vm185_vm2, %v462_v62 }
 0x1d0   :  { %2782 = vmatpush3.bf16.msra.mxu0 %v3306_v17  ;;  %2544 = vmatprep.mubr.msk.f32.mxu0 %vm3140_vm0, %v3141_v1 }
 0x1d1   :  { %2783 = vmatprep.subr.bf16.mxu0 %v3139_v0 }
 0x1d4   :  { %2785 = vmatpush3.bf16.msra.mxu0 %v3326_v24 }
 0x1d5   :  { %2792 = vmatprep.subr.bf16.mxu0 %v3139_v0 }
 0x29a   :  { %v534_v63 = vpop.f32.mrb[4].mxu0  ;;  %v604_v3 = vpop.f32.mrb[4].mxu1 }
 0x29b   :  { %v679_v4 = vadd.f32 %v678_v2, %v534_v63  ;;  %v2502_v5 = vpop.f32.mrb[5].mxu0  ;;  %v2513_v6 = vpop.f32.mrb[5].mxu1  ;;  %v687_v10 = vadd.f32 %v686_v9, %v604_v3  ;;  %v1154_v63 = vld [vmem:[#allocation2 + $0x6] sm:$0x3] }
 0x29d   :  { %v2285_v7 = vmul.f32 -1.442695, %v679_v4  ;;  %v2286_v11 = vmul.f32 -1.442695, %v687_v10 }
 0x29f   :  { %2913 = vpow2.f32 %v2285_v7  ;;  %v1162_v7 = vld [vmem:[#allocation3 + $0x6] sm:$0x3] }
 0x2a0   :  { %2915 = vpow2.f32 %v2286_v11 }
 0x2a2   :  { %v674_v13 = vpop.f32.mrb[6].mxu0 }
 0x2a3   :  { %v2524_v14 = vpop.f32.mrb[7].mxu0  ;;  %v675_v20 = vadd.f32 %v3363_v42, %v674_v13 }
 0x2a9   :  { %v2914_v15 = vpop.eup %2913 }
 0x2aa   :  { %v683_v16 = vadd.f32 1.0, %v2914_v15  ;;  %v2916_v18 = vpop.eup %2915 }
 0x2ab   :  { %v691_v19 = vadd.f32 1.0, %v2916_v18 }
 0x2ac   :  { %2917 = vrcp.f32 %v683_v16 }
 0x2ad   :  { %2919 = vrcp.f32 %v691_v19 }
 0x2b6   :  { %v2918_v22 = vpop.eup %2917 }
 0x2b7   :  { %v695_v23 = vmul.f32 %v2918_v22, %v675_v20  ;;  %v2920_v28 = vpop.eup %2919 }
 0x2b8   :  { %v698_v29 = vsub.f32 1.0, %v2920_v28  ;;  %v700_v32 = vmul.f32 %v2920_v28, %v462_v62 }
 0x2b9   :  { %v696_v27 = vadd.f32 %v695_v23, %v694_v26  ;;  %v1170_v23 = vld [vmem:[#allocation4 + $0x6] sm:$0x3] }
 0x2bb   :  { %2921 = vtanh.f32 %v696_v27 }
 0x2c5   :  { %v2922_v30 = vpop.eup %2921 }
 0x2c6   :  { %v699_v31 = vmul.f32 %v2922_v30, %v698_v29 }
 0x2c8   :  { %v701_v33 = vadd.f32 %v700_v32, %v699_v31 }
 0x2ca   :  { %702 = vst.msk [vmem:[#allocation5 + $0x2] sm:$0x3] %vm463_vm3, %v701_v33  ;;  %2534 = vmatmul.mubr.msk.f32.vlgmr.msra.gmra.mrb[6].mxu1 %vm185_vm2, %v701_v33  ;;  %2545 = vmatmul.mubr.msk.f32.vlgmr.msra.gmra.mrb[8].mxu0 %vm185_vm2, %v701_v33 }
 0x2cb   :  { %2788 = vmatpush3.bf16.msra.mxu1 %v3321_v21  ;;  %2555 = vmatprep.mubr.msk.f32.mxu1 %vm3140_vm0, %v3141_v1 }
 0x2cc   :  { %2789 = vmatprep.subr.bf16.mxu1 %v3139_v0  ;;  %2794 = vmatpush3.bf16.msra.mxu0 %v3287_v8 }
 0x2cd   :  { %2795 = vmatprep.subr.bf16.mxu0 %v3139_v0  ;;  %2566 = vmatprep.mubr.msk.f32.mxu0 %vm3140_vm0, %v3141_v1 }
 0x2cf   :  { %2791 = vmatpush3.bf16.msra.mxu1 %v3333_v25 }
 0x2d0   :  { %2798 = vmatprep.subr.bf16.mxu1 %v3139_v0  ;;  %2797 = vmatpush3.bf16.msra.mxu0 %v3296_v12 }
 0x2d1   :  { %2804 = vmatprep.subr.bf16.mxu0 %v3139_v0 }
 0x2d2   :  { %2556 = vmatmul.mubr.msk.f32.vlgmr.msra.gmra.mrb[8].mxu1 %vm185_vm2, %v701_v33 }
 0x2d3   :  { %2800 = vmatpush3.bf16.msra.mxu1 %v3306_v17  ;;  %2577 = vmatprep.mubr.msk.f32.mxu1 %vm3140_vm0, %v3141_v1 }
 0x2d4   :  { %2801 = vmatprep.subr.bf16.mxu1 %v3139_v0 }
 0x2d7   :  { %2803 = vmatpush3.bf16.msra.mxu1 %v3326_v24 }
 0x2d8   :  { %2810 = vmatprep.subr.bf16.mxu1 %v3139_v0 }
 0x39d   :  { %v772_v34 = vpop.f32.mrb[6].mxu1  ;;  %v842_v36 = vpop.f32.mrb[8].mxu0 }
 0x39e   :  { %v917_v37 = vadd.f32 %v916_v35, %v772_v34  ;;  %v2535_v38 = vpop.f32.mrb[7].mxu1  ;;  %v2546_v39 = vpop.f32.mrb[9].mxu0  ;;  %v925_v43 = vadd.f32 %v924_v41, %v842_v36  ;;  %v1392_v34 = vld [vmem:[#allocation2 + $0x8] sm:$0x3] }
 0x3a0   :  { %v2290_v40 = vmul.f32 -1.442695, %v917_v37  ;;  %v2291_v44 = vmul.f32 -1.442695, %v925_v43 }
 0x3a2   :  { %2923 = vpow2.f32 %v2290_v40  ;;  %v1400_v40 = vld [vmem:[#allocation3 + $0x8] sm:$0x3] }
 0x3a3   :  { %2925 = vpow2.f32 %v2291_v44 }
 0x3a5   :  { %v912_v45 = vpop.f32.mrb[8].mxu1 }
 0x3a6   :  { %v2557_v46 = vpop.f32.mrb[9].mxu1  ;;  %v913_v51 = vadd.f32 %v3363_v42, %v912_v45 }
 0x3ac   :  { %v2924_v47 = vpop.eup %2923 }
 0x3ad   :  { %v921_v48 = vadd.f32 1.0, %v2924_v47  ;;  %v2926_v49 = vpop.eup %2925 }
 0x3ae   :  { %v929_v50 = vadd.f32 1.0, %v2926_v49 }
 0x3af   :  { %2927 = vrcp.f32 %v921_v48 }
 0x3b0   :  { %2929 = vrcp.f32 %v929_v50 }
 0x3b9   :  { %v2928_v52 = vpop.eup %2927 }
 0x3ba   :  { %v933_v53 = vmul.f32 %v2928_v52, %v913_v51  ;;  %v2930_v56 = vpop.eup %2929 }
 0x3bb   :  { %v936_v57 = vsub.f32 1.0, %v2930_v56  ;;  %v938_v60 = vmul.f32 %v2930_v56, %v701_v33 }
 0x3bc   :  { %v934_v55 = vadd.f32 %v933_v53, %v932_v54  ;;  %v1408_v53 = vld [vmem:[#allocation4 + $0x8] sm:$0x3] }
 0x3be   :  { %2931 = vtanh.f32 %v934_v55 }
 0x3c8   :  { %v2932_v58 = vpop.eup %2931 }
 0x3c9   :  { %v937_v59 = vmul.f32 %v2932_v58, %v936_v57 }
 0x3cb   :  { %v939_v61 = vadd.f32 %v938_v60, %v937_v59 }
 0x3cd   :  { %940 = vst.msk [vmem:[#allocation5 + $0x4] sm:$0x3] %vm463_vm3, %v939_v61  ;;  %2567 = vmatmul.mubr.msk.f32.vlgmr.msra.gmra.mrb[10].mxu0 %vm185_vm2, %v939_v61  ;;  %2578 = vmatmul.mubr.msk.f32.vlgmr.msra.gmra.mrb[10].mxu1 %vm185_vm2, %v939_v61 }
 0x3ce   :  { %2806 = vmatpush3.bf16.msra.mxu0 %v3321_v21  ;;  %2588 = vmatprep.mubr.msk.f32.mxu0 %vm3140_vm0, %v3141_v1 }
 0x3cf   :  { %2807 = vmatprep.subr.bf16.mxu0 %v3139_v0  ;;  %2812 = vmatpush3.bf16.msra.mxu1 %v3287_v8 }
 0x3d0   :  { %2813 = vmatprep.subr.bf16.mxu1 %v3139_v0  ;;  %2599 = vmatprep.mubr.msk.f32.mxu1 %vm3140_vm0, %v3141_v1 }
 0x3d2   :  { %2809 = vmatpush3.bf16.msra.mxu0 %v3333_v25 }
 0x3d3   :  { %2816 = vmatprep.subr.bf16.mxu0 %v3139_v0  ;;  %2815 = vmatpush3.bf16.msra.mxu1 %v3296_v12 }
 0x3d4   :  { %2822 = vmatprep.subr.bf16.mxu1 %v3139_v0 }
 0x3d5   :  { %2589 = vmatmul.mubr.msk.f32.vlgmr.msra.gmra.mrb[12].mxu0 %vm185_vm2, %v939_v61 }
 0x3d6   :  { %2818 = vmatpush3.bf16.msra.mxu0 %v3306_v17  ;;  %2610 = vmatprep.mubr.msk.f32.mxu0 %vm3140_vm0, %v3141_v1 }
 0x3d7   :  { %2819 = vmatprep.subr.bf16.mxu0 %v3139_v0 }
 0x3da   :  { %2821 = vmatpush3.bf16.msra.mxu0 %v3326_v24 }
 0x3db   :  { %2828 = vmatprep.subr.bf16.mxu0 %v3139_v0 }
 0x4a0   :  { %v1010_v62 = vpop.f32.mrb[10].mxu0  ;;  %v1080_v2 = vpop.f32.mrb[10].mxu1 }
 0x4a1   :  { %v1155_v3 = vadd.f32 %v1154_v63, %v1010_v62  ;;  %v2568_v4 = vpop.f32.mrb[11].mxu0  ;;  %v2579_v5 = vpop.f32.mrb[11].mxu1  ;;  %v1163_v9 = vadd.f32 %v1162_v7, %v1080_v2  ;;  %v1630_v62 = vld [vmem:[#allocation2 + $0xa] sm:$0x3] }
 0x4a3   :  { %v2295_v6 = vmul.f32 -1.442695, %v1155_v3  ;;  %v2296_v10 = vmul.f32 -1.442695, %v1163_v9 }
 0x4a5   :  { %2933 = vpow2.f32 %v2295_v6  ;;  %v1638_v6 = vld [vmem:[#allocation3 + $0xa] sm:$0x3] }
 0x4a6   :  { %2935 = vpow2.f32 %v2296_v10 }
 0x4a8   :  { %v1150_v11 = vpop.f32.mrb[12].mxu0 }
 0x4a9   :  { %v2590_v13 = vpop.f32.mrb[13].mxu0  ;;  %v1151_v19 = vadd.f32 %v3363_v42, %v1150_v11 }
 0x4af   :  { %v2934_v14 = vpop.eup %2933 }
 0x4b0   :  { %v1159_v15 = vadd.f32 1.0, %v2934_v14  ;;  %v2936_v16 = vpop.eup %2935 }
 0x4b1   :  { %v1167_v18 = vadd.f32 1.0, %v2936_v16 }
 0x4b2   :  { %2937 = vrcp.f32 %v1159_v15 }
 0x4b3   :  { %2939 = vrcp.f32 %v1167_v18 }
 0x4bc   :  { %v2938_v20 = vpop.eup %2937 }
 0x4bd   :  { %v1171_v22 = vmul.f32 %v2938_v20, %v1151_v19  ;;  %v2940_v27 = vpop.eup %2939 }
 0x4be   :  { %v1174_v28 = vsub.f32 1.0, %v2940_v27  ;;  %v1176_v31 = vmul.f32 %v2940_v27, %v939_v61 }
 0x4bf   :  { %v1172_v26 = vadd.f32 %v1171_v22, %v1170_v23  ;;  %v1646_v22 = vld [vmem:[#allocation4 + $0xa] sm:$0x3] }
 0x4c1   :  { %2941 = vtanh.f32 %v1172_v26 }
 0x4cb   :  { %v2942_v29 = vpop.eup %2941 }
 0x4cc   :  { %v1175_v30 = vmul.f32 %v2942_v29, %v1174_v28 }
 0x4ce   :  { %v1177_v32 = vadd.f32 %v1176_v31, %v1175_v30 }
 0x4d0   :  { %1178 = vst.msk [vmem:[#allocation5 + $0x6] sm:$0x3] %vm463_vm3, %v1177_v32  ;;  %2600 = vmatmul.mubr.msk.f32.vlgmr.msra.gmra.mrb[12].mxu1 %vm185_vm2, %v1177_v32  ;;  %2611 = vmatmul.mubr.msk.f32.vlgmr.msra.gmra.mrb[14].mxu0 %vm185_vm2, %v1177_v32 }
 0x4d1   :  { %2824 = vmatpush3.bf16.msra.mxu1 %v3321_v21  ;;  %2621 = vmatprep.mubr.msk.f32.mxu1 %vm3140_vm0, %v3141_v1 }
 0x4d2   :  { %2825 = vmatprep.subr.bf16.mxu1 %v3139_v0  ;;  %2830 = vmatpush3.bf16.msra.mxu0 %v3287_v8 }
 0x4d3   :  { %2831 = vmatprep.subr.bf16.mxu0 %v3139_v0  ;;  %2632 = vmatprep.mubr.msk.f32.mxu0 %vm3140_vm0, %v3141_v1 }
 0x4d5   :  { %2827 = vmatpush3.bf16.msra.mxu1 %v3333_v25 }
 0x4d6   :  { %2834 = vmatprep.subr.bf16.mxu1 %v3139_v0  ;;  %2833 = vmatpush3.bf16.msra.mxu0 %v3296_v12 }
 0x4d7   :  { %2840 = vmatprep.subr.bf16.mxu0 %v3139_v0 }
 0x4d8   :  { %2622 = vmatmul.mubr.msk.f32.vlgmr.msra.gmra.mrb[14].mxu1 %vm185_vm2, %v1177_v32 }
 0x4d9   :  { %2836 = vmatpush3.bf16.msra.mxu1 %v3306_v17  ;;  %2643 = vmatprep.mubr.msk.f32.mxu1 %vm3140_vm0, %v3141_v1 }
 0x4da   :  { %2837 = vmatprep.subr.bf16.mxu1 %v3139_v0 }
 0x4dd   :  { %2839 = vmatpush3.bf16.msra.mxu1 %v3326_v24 }
 0x4de   :  { %2846 = vmatprep.subr.bf16.mxu1 %v3139_v0 }
 0x5a3   :  { %v1248_v33 = vpop.f32.mrb[12].mxu1  ;;  %v1318_v35 = vpop.f32.mrb[14].mxu0 }
 0x5a4   :  { %v1393_v36 = vadd.f32 %v1392_v34, %v1248_v33  ;;  %v2601_v37 = vpop.f32.mrb[13].mxu1  ;;  %v2612_v38 = vpop.f32.mrb[15].mxu0  ;;  %v1401_v41 = vadd.f32 %v1400_v40, %v1318_v35 }
 0x5a5   :  { %v1876_v37 = vld [vmem:[#allocation3 + $0xc] sm:$0x3] }
 0x5a6   :  { %v2300_v39 = vmul.f32 -1.442695, %v1393_v36  ;;  %v2301_v43 = vmul.f32 -1.442695, %v1401_v41 }
 0x5a8   :  { %2943 = vpow2.f32 %v2300_v39 }
 0x5a9   :  { %2945 = vpow2.f32 %v2301_v43 }
 0x5ab   :  { %v1388_v44 = vpop.f32.mrb[14].mxu1 }
 0x5ac   :  { %v2623_v45 = vpop.f32.mrb[15].mxu1  ;;  %v1389_v50 = vadd.f32 %v3363_v42, %v1388_v44 }
 0x5b2   :  { %v2944_v46 = vpop.eup %2943 }
 0x5b3   :  { %v1397_v47 = vadd.f32 1.0, %v2944_v46  ;;  %v2946_v48 = vpop.eup %2945 }
 0x5b4   :  { %v1405_v49 = vadd.f32 1.0, %v2946_v48  ;;  %v1884_v48 = vld [vmem:[#allocation4 + $0xc] sm:$0x3] }
 0x5b5   :  { %2947 = vrcp.f32 %v1397_v47 }
 0x5b6   :  { %2949 = vrcp.f32 %v1405_v49 }
 0x5bf   :  { %v2948_v51 = vpop.eup %2947 }
 0x5c0   :  { %v1409_v52 = vmul.f32 %v2948_v51, %v1389_v50  ;;  %v2950_v55 = vpop.eup %2949 }
 0x5c1   :  { %v1412_v56 = vsub.f32 1.0, %v2950_v55  ;;  %v1414_v59 = vmul.f32 %v2950_v55, %v1177_v32  ;;  %v1868_v32 = vld [vmem:[#allocation2 + $0xc] sm:$0x3] }
 0x5c2   :  { %v1410_v54 = vadd.f32 %v1409_v52, %v1408_v53 }
 0x5c4   :  { %2951 = vtanh.f32 %v1410_v54 }
 0x5ce   :  { %v2952_v57 = vpop.eup %2951 }
 0x5cf   :  { %v1413_v58 = vmul.f32 %v2952_v57, %v1412_v56  ;;  %v2131_v56 = vld [vmem:[#allocation5] sm:$0xff]  ;;  %v2133_v57 = vld [vmem:[%s3574_s8] sm:$0xff] }
 0x5d1   :  { %v1415_v60 = vadd.f32 %v1414_v59, %v1413_v58  ;;  %v2134_v58 = vld [vmem:[%s3574_s8 + $0x8] sm:$0xff] }
 0x5d3   :  { %1416 = vst.msk [vmem:[#allocation5 + $0x8] sm:$0x3] %vm463_vm3, %v1415_v60  ;;  %2633 = vmatmul.mubr.msk.f32.vlgmr.msra.gmra.mrb[16].mxu0 %vm185_vm2, %v1415_v60  ;;  %2644 = vmatmul.mubr.msk.f32.vlgmr.msra.gmra.mrb[16].mxu1 %vm185_vm2, %v1415_v60 }
 0x5d4   :  { %2842 = vmatpush3.bf16.msra.mxu0 %v3321_v21  ;;  %2654 = vmatprep.mubr.msk.f32.mxu0 %vm3140_vm0, %v3141_v1 }
 0x5d5   :  { %2843 = vmatprep.subr.bf16.mxu0 %v3139_v0  ;;  %2848 = vmatpush3.bf16.msra.mxu1 %v3287_v8 }
 0x5d6   :  { %2849 = vmatprep.subr.bf16.mxu1 %v3139_v0  ;;  %2665 = vmatprep.mubr.msk.f32.mxu1 %vm3140_vm0, %v3141_v1 }
 0x5d8   :  { %2845 = vmatpush3.bf16.msra.mxu0 %v3333_v25 }
 0x5d9   :  { %2852 = vmatprep.subr.bf16.mxu0 %v3139_v0  ;;  %2851 = vmatpush3.bf16.msra.mxu1 %v3296_v12 }
 0x5da   :  { %2858 = vmatprep.subr.bf16.mxu1 %v3139_v0 }
 0x5db   :  { %2655 = vmatmul.mubr.msk.f32.vlgmr.msra.gmra.mrb[18].mxu0 %vm185_vm2, %v1415_v60 }
 0x5dc   :  { %2854 = vmatpush3.bf16.msra.mxu0 %v3306_v17  ;;  %2676 = vmatprep.mubr.msk.f32.mxu0 %vm3140_vm0, %v3141_v1 }
 0x5dd   :  { %2855 = vmatprep.subr.bf16.mxu0 %v3139_v0 }
 0x5e0   :  { %2857 = vmatpush3.bf16.msra.mxu0 %v3326_v24 }
 0x5e1   :  { %2864 = vmatprep.subr.bf16.mxu0 %v3139_v0 }
 0x6a6   :  { %v1486_v61 = vpop.f32.mrb[16].mxu0  ;;  %v1556_v63 = vpop.f32.mrb[16].mxu1 }
 0x6a7   :  { %v1631_v2 = vadd.f32 %v1630_v62, %v1486_v61  ;;  %v2634_v3 = vpop.f32.mrb[17].mxu0  ;;  %v2645_v4 = vpop.f32.mrb[17].mxu1  ;;  %v1639_v7 = vadd.f32 %v1638_v6, %v1556_v63 }
 0x6a8   :  { %v2114_v4 = vld [vmem:[#allocation3 + $0xe] sm:$0x3] }
 0x6a9   :  { %v2305_v5 = vmul.f32 -1.442695, %v1631_v2  ;;  %v2306_v9 = vmul.f32 -1.442695, %v1639_v7 }
 0x6ab   :  { %2953 = vpow2.f32 %v2305_v5 }
 0x6ac   :  { %2955 = vpow2.f32 %v2306_v9 }
 0x6ae   :  { %v1626_v10 = vpop.f32.mrb[18].mxu0 }
 0x6af   :  { %v2656_v11 = vpop.f32.mrb[19].mxu0  ;;  %v1627_v18 = vadd.f32 %v3363_v42, %v1626_v10 }
 0x6b5   :  { %v2954_v13 = vpop.eup %2953 }
 0x6b6   :  { %v1635_v14 = vadd.f32 1.0, %v2954_v13  ;;  %v2956_v15 = vpop.eup %2955 }
 0x6b7   :  { %v1643_v16 = vadd.f32 1.0, %v2956_v15 }
 0x6b8   :  { %2957 = vrcp.f32 %v1635_v14 }
 0x6b9   :  { %2959 = vrcp.f32 %v1643_v16 }
 0x6c2   :  { %v2958_v19 = vpop.eup %2957 }
 0x6c3   :  { %v1647_v20 = vmul.f32 %v2958_v19, %v1627_v18  ;;  %v2960_v26 = vpop.eup %2959  ;;  %v2122_v19 = vld [vmem:[#allocation4 + $0xe] sm:$0x3] }
 0x6c4   :  { %v1650_v27 = vsub.f32 1.0, %v2960_v26  ;;  %v1652_v30 = vmul.f32 %v2960_v26, %v1415_v60  ;;  %v2106_v60 = vld [vmem:[#allocation2 + $0xe] sm:$0x3] }
 0x6c5   :  { %v1648_v23 = vadd.f32 %v1647_v20, %v1646_v22 }
 0x6c7   :  { %2961 = vtanh.f32 %v1648_v23 }
 0x6d1   :  { %v2962_v28 = vpop.eup %2961 }
 0x6d2   :  { %v1651_v29 = vmul.f32 %v2962_v28, %v1650_v27 }
 0x6d4   :  { %v1653_v31 = vadd.f32 %v1652_v30, %v1651_v29 }
 0x6d6   :  { %1654 = vst.msk [vmem:[#allocation5 + $0xa] sm:$0x3] %vm463_vm3, %v1653_v31  ;;  %2666 = vmatmul.mubr.msk.f32.vlgmr.msra.gmra.mrb[18].mxu1 %vm185_vm2, %v1653_v31  ;;  %2677 = vmatmul.mubr.msk.f32.vlgmr.msra.gmra.mrb[20].mxu0 %vm185_vm2, %v1653_v31 }
 0x6d7   :  { %2860 = vmatpush3.bf16.msra.mxu1 %v3321_v21  ;;  %2687 = vmatprep.mubr.msk.f32.mxu1 %vm3140_vm0, %v3141_v1 }
 0x6d8   :  { %2861 = vmatprep.subr.bf16.mxu1 %v3139_v0  ;;  %2866 = vmatpush3.bf16.msra.mxu0 %v3287_v8 }
 0x6d9   :  { %2867 = vmatprep.subr.bf16.mxu0 %v3139_v0  ;;  %2698 = vmatprep.mubr.msk.f32.mxu0 %vm3140_vm0, %v3141_v1 }
 0x6db   :  { %2863 = vmatpush3.bf16.msra.mxu1 %v3333_v25 }
 0x6dc   :  { %2870 = vmatprep.subr.bf16.mxu1 %v3139_v0  ;;  %2869 = vmatpush3.bf16.msra.mxu0 %v3296_v12 }
 0x6dd   :  { %2876 = vmatprep.subr.bf16.mxu0 %v3139_v0 }
 0x6de   :  { %2688 = vmatmul.mubr.msk.f32.vlgmr.msra.gmra.mrb[20].mxu1 %vm185_vm2, %v1653_v31 }
 0x6df   :  { %2872 = vmatpush3.bf16.msra.mxu1 %v3306_v17  ;;  %2709 = vmatprep.mubr.msk.f32.mxu1 %vm3140_vm0, %v3141_v1 }
 0x6e0   :  { %2873 = vmatprep.subr.bf16.mxu1 %v3139_v0 }
 0x6e3   :  { %2875 = vmatpush3.bf16.msra.mxu1 %v3326_v24 }
 0x7a9   :  { %v1724_v8 = vpop.f32.mrb[18].mxu1  ;;  %v1794_v33 = vpop.f32.mrb[20].mxu0 }
 0x7aa   :  { %v1869_v34 = vadd.f32 %v1868_v32, %v1724_v8  ;;  %v2667_v35 = vpop.f32.mrb[19].mxu1  ;;  %v2678_v36 = vpop.f32.mrb[21].mxu0  ;;  %v1877_v38 = vadd.f32 %v1876_v37, %v1794_v33 }
 0x7ac   :  { %v2310_v12 = vmul.f32 -1.442695, %v1869_v34  ;;  %v2311_v39 = vmul.f32 -1.442695, %v1877_v38 }
 0x7ae   :  { %2963 = vpow2.f32 %v2310_v12 }
 0x7af   :  { %2965 = vpow2.f32 %v2311_v39 }
 0x7b1   :  { %v1864_v40 = vpop.f32.mrb[20].mxu1 }
 0x7b2   :  { %v2689_v17 = vpop.f32.mrb[21].mxu1  ;;  %v1865_v24 = vadd.f32 %v3363_v42, %v1864_v40 }
 0x7b8   :  { %v2964_v41 = vpop.eup %2963 }
 0x7b9   :  { %v1873_v43 = vadd.f32 1.0, %v2964_v41  ;;  %v2966_v44 = vpop.eup %2965 }
 0x7ba   :  { %v1881_v45 = vadd.f32 1.0, %v2966_v44 }
 0x7bb   :  { %2967 = vrcp.f32 %v1873_v43 }
 0x7bc   :  { %2969 = vrcp.f32 %v1881_v45 }
 0x7c5   :  { %v2968_v46 = vpop.eup %2967 }
 0x7c6   :  { %v1885_v47 = vmul.f32 %v2968_v46, %v1865_v24  ;;  %v2970_v50 = vpop.eup %2969 }
 0x7c7   :  { %v1888_v51 = vsub.f32 1.0, %v2970_v50  ;;  %v1890_v54 = vmul.f32 %v2970_v50, %v1653_v31 }
 0x7c8   :  { %v1886_v49 = vadd.f32 %v1885_v47, %v1884_v48 }
 0x7ca   :  { %2971 = vtanh.f32 %v1886_v49 }
 0x7d4   :  { %v2972_v52 = vpop.eup %2971 }
 0x7d5   :  { %v1889_v53 = vmul.f32 %v2972_v52, %v1888_v51 }
 0x7d7   :  { %v1891_v55 = vadd.f32 %v1890_v54, %v1889_v53 }
 0x7d9   :  { %1892 = vst.msk [vmem:[#allocation5 + $0xc] sm:$0x3] %vm463_vm3, %v1891_v55  ;;  %2699 = vmatmul.mubr.msk.f32.vlgmr.msra.gmra.mrb[22].mxu0 %vm185_vm2, %v1891_v55  ;;  %2710 = vmatmul.mubr.msk.f32.vlgmr.msra.gmra.mrb[22].mxu1 %vm185_vm2, %v1891_v55 }
 0x7da   :  { %2878 = vmatpush3.bf16.msra.mxu0 %v3321_v21  ;;  %2731 = vmatprep.mubr.msk.f32.mxu1 %vm185_vm2, %v2131_v56  ;;  %v2135_v21 = vld [vmem:[%s3574_s8 + $0x10] sm:$0xff] }
 0x7db   :  { %2879 = vmatprep.subr.bf16.mxu0 %v3139_v0  ;;  %2720 = vmatprep.mubr.msk.f32.mxu0 %vm3140_vm0, %v3141_v1  ;;  %v2882_v0 = vpack.c.bf16 %v2134_v58, %v2133_v57  ;;  %v2136_v1 = vld [vmem:[%s3574_s8 + $0x18] sm:$0xff]  ;;  %s3144_s8 = smov [#allocation15]  }
 0x7dc   :  { %s2258_s16 = sshll.u32 %s3144_s8, 4  ;;  %s2259_s16 = int_to_ptr.vmem [resolvable:$true] %s2258_s16 }
 0x7dd   :  { %2883 = vmatprep.subr.bf16.mxu1 %v2882_v0  ;;  %s3079_s17 = scalar_lea.vmem %s2259_s16, 32  ;;  %p3084_p5 = scmp.lt.s32.totalorder %s2259_s16, %s2259_s16 }
 0x7de   :  { %2881 = vmatpush3.bf16.msra.mxu0 %v3333_v25  ;;  %v2886_v25 = vpack.c.bf16 %v2136_v1, %v2135_v21  ;;  %2885 = vmatpush3.bf16.msra.mxu1 %v2882_v0  ;;  %p3080_p4 = scmp.ne.s32.totalorder %s2259_s16, %s3079_s17  ;;  %p3085_p6 = scmp.lt.s32.totalorder %s3079_s17, %s3079_s17 }
 0x7e0   :  { %2887 = vmatprep.subr.bf16.mxu1 %v2886_v25  ;;  %p3086_p7 = por %p3085_p6, %p3084_p5 }
 0x7e1   :  { %2721 = vmatmul.mubr.msk.f32.vlgmr.msra.gmra.mrb[24].mxu0 %vm185_vm2, %v1891_v55 }
 0x7e2   :  { %2889 = vmatpush3.bf16.msra.mxu1 %v2886_v25  ;;  %p3087_p8 = pnand %p3086_p7, %p3080_p4 }
 0x8ac   :  { %v1962_v59 = vpop.f32.mrb[22].mxu0  ;;  %v2032_v61 = vpop.f32.mrb[22].mxu1 }
 0x8ad   :  { %v2107_v62 = vadd.f32 %v2106_v60, %v1962_v59  ;;  %v2700_v63 = vpop.f32.mrb[23].mxu0  ;;  %v2711_v2 = vpop.f32.mrb[23].mxu1  ;;  %v2115_v5 = vadd.f32 %v2114_v4, %v2032_v61 }
 0x8af   :  { %v2315_v3 = vmul.f32 -1.442695, %v2107_v62  ;;  %v2316_v6 = vmul.f32 -1.442695, %v2115_v5 }
 0x8b1   :  { %2973 = vpow2.f32 %v2315_v3 }
 0x8b2   :  { %2975 = vpow2.f32 %v2316_v6 }
 0x8b4   :  { %v2102_v7 = vpop.f32.mrb[24].mxu0 }
 0x8b5   :  { %v2722_v9 = vpop.f32.mrb[25].mxu0  ;;  %v2103_v15 = vadd.f32 %v3363_v42, %v2102_v7 }
 0x8bb   :  { %v2974_v10 = vpop.eup %2973 }
 0x8bc   :  { %v2111_v11 = vadd.f32 1.0, %v2974_v10  ;;  %v2976_v13 = vpop.eup %2975 }
 0x8bd   :  { %v2119_v14 = vadd.f32 1.0, %v2976_v13 }
 0x8be   :  { %2977 = vrcp.f32 %v2111_v11 }
 0x8bf   :  { %2979 = vrcp.f32 %v2119_v14 }
 0x8c8   :  { %v2978_v16 = vpop.eup %2977 }
 0x8c9   :  { %v2123_v18 = vmul.f32 %v2978_v16, %v2103_v15  ;;  %v2980_v22 = vpop.eup %2979 }
 0x8ca   :  { %v2126_v23 = vsub.f32 1.0, %v2980_v22  ;;  %v2128_v27 = vmul.f32 %v2980_v22, %v1891_v55 }
 0x8cb   :  { %v2124_v20 = vadd.f32 %v2123_v18, %v2122_v19 }
 0x8cd   :  { %2981 = vtanh.f32 %v2124_v20 }
 0x8d7   :  { %v2982_v26 = vpop.eup %2981 }
 0x8d8   :  { %v2127_v28 = vmul.f32 %v2982_v26, %v2126_v23 }
 0x8da   :  { %v2129_v29 = vadd.f32 %v2128_v27, %v2127_v28 }
 0x8dc   :  { %2130 = vst.msk [vmem:[#allocation5 + $0xe] sm:$0x3] %vm463_vm3, %v2129_v29  ;;  %2239 = vst.msk [vmem:[#allocation15] sm:$0x3] %vm463_vm3, %v2129_v29 }
 0x8e3   :  { %v2132_v30 = vld [vmem:[#allocation5 + $0x8] sm:$0xff] }
 0x8e4   :  { %2732 = vmatmul.mubr.msk.f32.vlgmr.msra.gmra.mrb[24].mxu1 %vm185_vm2, %v2132_v30 }
 0x8e5   :  { %3090 = shalt.err (!%p3087_p8)
}
 0x8e6   :  { %s3091_s19 = scalar_lea.hbm %s3577_s11, 32 }
 0x8e7   :  { %p3092_p9 = scmp.ne.s32.totalorder %s3577_s11, %s3091_s19  ;;  %p3095_p10 = scmp.lt.u32.totalorder %s3091_s19, %s3577_s11 }
 0x8e9   :  { %p3097_p11 = pnand %p3095_p10, %p3092_p9 }
 0x8eb   :  { %3100 = shalt.err (!%p3097_p11)
}
 0x8ec   :  { %2261 = dma.vmem_to_hbm [thread:$0]  %s2259_s16, 32, %s3577_s11, [#allocation16]   ;;  %v2317_v42 = vld [vmem:[%s3575_s9] ss:$0 sm:$0xff] }
 0x8ed   :  { %s3145_s1 = smov [#allocation14]  }
 0x8ee   :  { %s2245_s11 = sshll.u32 %s3145_s1, 4  ;;  %s2246_s11 = int_to_ptr.vmem [resolvable:$true] %s2245_s11 }
 0x8ef   :  { %s3101_s9 = scalar_lea.vmem %s2246_s11, 256  ;;  %p3106_p13 = scmp.lt.s32.totalorder %s2246_s11, %s2246_s11 }
 0x8f0   :  { %p3102_p12 = scmp.ne.s32.totalorder %s2246_s11, %s3101_s9  ;;  %p3107_p0 = scmp.lt.s32.totalorder %s3101_s9, %s3101_s9 }
 0x8f2   :  { %p3108_p1 = por %p3107_p0, %p3106_p13 }
 0x8f4   :  { %p3109_p2 = pnand %p3108_p1, %p3102_p12 }
 0x9b7   :  { %v2733_v31 = vpop.f32.mrb[24].mxu1 }
 0x9b8   :  { %v2222_v8 = vadd.f32 %v2733_v31, %v2317_v42  ;;  %v2216_v32 = vpop.f32.mrb[25].mxu1 }
 0x9b9   :  { %v2217_v33 = vadd.f32 %v2317_v42, %v2216_v32 }
 0x9ba   :  { %v2321_v34 = vmul.f32 -1.442695, %v2222_v8 }
 0x9bb   :  { %v2320_v35 = vmul.f32 -1.442695, %v2217_v33 }
 0x9bc   :  { %2983 = vpow2.f32 %v2321_v34 }
 0x9bd   :  { %2985 = vpow2.f32 %v2320_v35 }
 0x9c6   :  { %v2984_v36 = vpop.eup %2983 }
 0x9c7   :  { %v2986_v12 = vpop.eup %2985  ;;  %v2232_v37 = vadd.f32 1.0, %v2984_v36 }
 0x9c8   :  { %v2231_v38 = vadd.f32 1.0, %v2986_v12 }
 0x9c9   :  { %2987 = vrcp.f32 %v2232_v37 }
 0x9ca   :  { %2989 = vrcp.f32 %v2231_v38 }
 0x9d3   :  { %v2988_v39 = vpop.eup %2987 }
 0x9d4   :  { %v2990_v40 = vpop.eup %2989  ;;  %2238 = vst.msk [vmem:[#allocation14 + $0x8] sm:$0xff] %vm103_vm1, %v2988_v39 }
 0x9d5   :  { %2237 = vst.msk [vmem:[#allocation14] sm:$0xff] %vm103_vm1, %v2990_v40 }
 0x9d6   :  { %3112 = shalt.err (!%p3109_p2)
}
 0x9d7   :  { %s3113_s12 = scalar_lea.hbm %s3576_s10, 256 }
 0x9d8   :  { %p3114_p3 = scmp.ne.s32.totalorder %s3576_s10, %s3113_s12  ;;  %p3117_p4 = scmp.lt.u32.totalorder %s3113_s12, %s3576_s10 }
 0x9da   :  { %p3119_p5 = pnand %p3117_p4, %p3114_p3 }
 0x9dc   :  { %3122 = shalt.err (!%p3119_p5)
}
 0x9dd   :  { %2251 = dma.vmem_to_hbm [thread:$0]  %s2246_s11, 256, %s3576_s10, [#allocation8], %s3135_s29, %s3135_s29, %s3136_s30  }
 0x9de   :  { %3129 = dma.done.wait [#allocation8], 256  }
 0x9df   :  { %3130 = vsyncadd [#allocation8], 4294967040 }
 0x9e0   :  { %3131 = dma.done.wait [#allocation16], 32  }
 0x9e1   :  { %3132 = vsyncadd [#allocation16], 4294967264 }
 0x9e2   :  { %2268 = vsyncpa [#allocation7], 1 }
 0x9e3   :  { %2269 = vsyncpa [#allocation10], 1 }
 0x9e4   :  { %2270 = vsyncpa [#allocation13], 1 }
 0x9e5   :  { %2271 = vsyncpa [#allocation8], 1 }
 0x9e6   :  { %2272 = vsyncpa [#allocation16], 1 }

</bundles_post_ra>
